<compile_context>
chip_gen: v7x
topology: tpu7x:2x2x1
jax: 0.10.0
libtpu: 0.0.40
codegen_flags: <defaults>
</compile_context>

<pallas_src>
import functools

import jax
import jax.numpy as jnp
from jax.experimental import pallas as pl
from jax.experimental.pallas import tpu as pltpu


def _gru_dec_kernel(gi_ref, whh_t_ref, out_ref, h_ref, *, tc, d):
    """One time-chunk of the GRU decoder.

    gi_ref    : (B, Tc, 3D) f32  precomputed x @ W_ih^T for this chunk
    whh_t_ref : (D, 3D)          W_hh^T (gates stacked [r, z, n]); constant
    out_ref   : (B, Tc, D)       output slab for this chunk (batch-major)
    h_ref     : (B, D) f32       VMEM scratch hidden state (persists across grid)
    """

    @pl.when(pl.program_id(0) == 0)
    def _():
        h_ref[...] = jnp.zeros_like(h_ref)

    w = whh_t_ref[...]            # (D, 3D), loaded once per chunk
    h = h_ref[...]                # (B, D) f32 carry, lives in vregs inside chunk

    # Fully unrolled recurrence over the chunk: static indices -> static loads
    # and stores, LLO scheduler sees the whole chunk.
    for t in range(tc):
        gi = gi_ref[:, t, :]                                   # (B, 3D) f32
        gh = jnp.dot(h.astype(w.dtype), w,
                     preferred_element_type=jnp.float32)       # (B, 3D) f32
        r = jax.nn.sigmoid(gi[:, :d] + gh[:, :d])
        z = jax.nn.sigmoid(gi[:, d:2 * d] + gh[:, d:2 * d])
        n = jnp.tanh(gi[:, 2 * d:] + r * gh[:, 2 * d:])
        h = n + z * (h - n)                         # == (1 - z) * n + z * h
        out_ref[:, t, :] = h.astype(out_ref.dtype)

    h_ref[...] = h


def _pick_time_chunk(seq_len):
    """Chunk size: multiple of 8 (sublane tile), minimal end-padding, then
    prefer the larger chunk (more work per grid step to amortize overhead)."""
    return min((32, 16, 8), key=lambda c: ((-seq_len) % c, -c))


@functools.partial(jax.jit, static_argnames=("compute_dtype",))
def ps_rnn_dec_forward(h_enc, weight_ih, weight_hh, *, compute_dtype=jnp.float32):
    """Forward pass matching ps_RNNDec.forward.

    h_enc     : (B, T, D) float32
    weight_ih : (3D, D)   float32  (PyTorch GRUCell layout, gates [r, z, n])
    weight_hh : (3D, D)   float32
    returns   : (B, T, D) float32
    """
    B, T, D = h_enc.shape
    tc = _pick_time_chunk(T)
    t_pad = (-T) % tc
    Tp = T + t_pad

    # (1) Hoist the input projection off the sequential critical path:
    # one (B*T, D) x (D, 3D) matmul instead of T tiny (B, D) matmuls.
    # Output stays batch-major -> no activation transposes anywhere.
    gi_all = jnp.einsum(
        "btd,gd->btg",
        h_enc.astype(compute_dtype),
        weight_ih.astype(compute_dtype),
        preferred_element_type=jnp.float32,
    )                                                        # (B, T, 3D) f32
    if t_pad:
        # Causal recurrence: zero-padded trailing steps never affect the first
        # T outputs (which are all we return).
        gi_all = jnp.pad(gi_all, ((0, 0), (0, t_pad), (0, 0)))

    whh_t = jnp.transpose(weight_hh, (1, 0)).astype(compute_dtype)   # (D, 3D)

    kernel = functools.partial(_gru_dec_kernel, tc=tc, d=D)

    out = pl.pallas_call(
        kernel,
        out_shape=jax.ShapeDtypeStruct((B, Tp, D), h_enc.dtype),
        grid_spec=pltpu.PrefetchScalarGridSpec(
            num_scalar_prefetch=0,
            grid=(Tp // tc,),
            in_specs=[
                # Precomputed input projection, one (B, Tc, 3D) slab per step.
                pl.BlockSpec((B, tc, 3 * D), lambda i: (0, i, 0)),
                # Recurrent weight: constant block, re-used every grid step.
                # TODO(synk): for large D, single-buffer this block
                # (pipeline_mode=pl.Buffered(1)) or tile the 3D gate axis so
                # the 2x weight copy does not eat VMEM on v7x (64 MiB).
                pl.BlockSpec((D, 3 * D), lambda i: (0, 0)),
            ],
            out_specs=pl.BlockSpec((B, tc, D), lambda i: (0, i, 0)),
            scratch_shapes=[pltpu.VMEM((B, D), jnp.float32)],  # hidden state
        ),
        compiler_params=pltpu.CompilerParams(
            # Sequential recurrence over time chunks -> never mark "parallel".
            # (With many independent sequences, a leading "parallel" batch-chunk
            #  axis would light up v7x's second TensorCore.)
            dimension_semantics=("arbitrary",),
            vmem_limit_bytes=32 * 1024 * 1024,
        ),
    )(gi_all, whh_t)

    return out[:, :T, :] if t_pad else out


def init_params(key, input_dim):
    """Deterministic parameter init mirroring initialize_decoder()."""
    k_ih, k_hh = jax.random.split(key)
    # xavier_normal_ on weight_ih (3D, D): std = sqrt(2 / (fan_in + fan_out))
    fan_in, fan_out = input_dim, 3 * input_dim
    std = (2.0 / (fan_in + fan_out)) ** 0.5
    weight_ih = std * jax.random.normal(k_ih, (3 * input_dim, input_dim),
                                        dtype=jnp.float32)
    # orthogonal_-style init on weight_hh (3D, D): QR of a Gaussian.
    a = jax.random.normal(k_hh, (3 * input_dim, input_dim), dtype=jnp.float32)
    q, r_ = jnp.linalg.qr(a)
    q = q * jnp.sign(jnp.diagonal(r_))[None, :]
    weight_hh = q.astype(jnp.float32)
    # bias_ih / bias_hh are zeroed by initialize_decoder() -> omitted entirely.
    return weight_ih, weight_hh


def _reference_forward(h_enc, weight_ih, weight_hh):
    """Pure-JAX reference of the PyTorch forward (for the sanity check)."""
    B, T, D = h_enc.shape
    wih_t = weight_ih.T
    whh_t = weight_hh.T

    def step(h, x):
        gi = x @ wih_t
        gh = h @ whh_t
        i_r, i_z, i_n = gi[:, :D], gi[:, D:2 * D], gi[:, 2 * D:]
        h_r, h_z, h_n = gh[:, :D], gh[:, D:2 * D], gh[:, 2 * D:]
        r = jax.nn.sigmoid(i_r + h_r)
        z = jax.nn.sigmoid(i_z + h_z)
        n = jnp.tanh(i_n + r * h_n)
        h_new = (1.0 - z) * n + z * h
        return h_new, h_new

    h0 = jnp.zeros((B, D), jnp.float32)
    _, ys = jax.lax.scan(step, h0, jnp.transpose(h_enc, (1, 0, 2)))
    return jnp.transpose(ys, (1, 0, 2))


if __name__ == "__main__":
    batch, seq, input_dim = 2, 8, 128

    key = jax.random.PRNGKey(0)
    k_x, k_p = jax.random.split(key)
    h_enc = jax.random.normal(k_x, (batch, seq, input_dim), dtype=jnp.float32)
    weight_ih, weight_hh = init_params(k_p, input_dim)

    ref = _reference_forward(h_enc, weight_ih, weight_hh)

    # f32 path (exact check against the pure-JAX reference).
    out = ps_rnn_dec_forward(h_enc, weight_ih, weight_hh)
    out = jax.block_until_ready(out)
    assert out.shape == (batch, seq, input_dim)
    assert jnp.allclose(out, ref, atol=1e-5, rtol=1e-5)

    # bf16 MXU-operand path (native matmul dtype on v5e/v6e/v7x); f32
    # accumulation + f32 hidden carry, so only operand-rounding error remains.
    out_bf16 = jax.block_until_ready(
        ps_rnn_dec_forward(h_enc, weight_ih, weight_hh,
                           compute_dtype=jnp.bfloat16))
    assert float(jnp.max(jnp.abs(out_bf16 - ref))) < 0.25

    print("KERNEL_OK")
</pallas_src>

<mosaic_0001>
module attributes {stable_mosaic.version = 11 : i64} {
  func.func @_gru_dec_kernel(%arg0: i32, %arg1: memref<2x8x384xf32, #tpu.memory_space<vmem>>, %arg2: memref<128x384xf32, #tpu.memory_space<vmem>>, %arg3: memref<2x8x128xf32, #tpu.memory_space<vmem>>, %arg4: memref<2x128xf32, #tpu.memory_space<vmem>>) attributes {dimension_semantics = [#tpu.dimension_semantics<arbitrary>], iteration_bounds = array<i64: 1>, scalar_prefetch = 0 : i64, scratch_operands = 1 : i64, tpu.core_type = #tpu.core_type<tc>, window_params = [{transform_indices = @transform_0, window_bounds = array<i64: 2, 8, 384>}, {pipeline_mode = #tpu.pipeline_mode<synchronous>, transform_indices = @transform_1, window_bounds = array<i64: 128, 384>}, {transform_indices = @transform_2, window_bounds = array<i64: 2, 8, 128>}]} {
    %c0_i32 = arith.constant 0 : i32
    %0 = arith.cmpi eq, %arg0, %c0_i32 : i32
    %1 = arith.extui %0 : i1 to i32
    %c0_i32_0 = arith.constant 0 : i32
    %2 = arith.cmpi ne, %1, %c0_i32_0 : i32
    scf.if %2 {
      %cst_70 = arith.constant 0.000000e+00 : f32
      %246 = vector.broadcast %cst_70 : f32 to vector<2x128xf32>
      %c0_71 = arith.constant 0 : index
      %c0_72 = arith.constant 0 : index
      %247 = vector.load %arg4[%c0_71, %c0_72] : memref<2x128xf32, #tpu.memory_space<vmem>>, vector<2x128xf32>
      tpu.vector_store %arg4[%c0_71, %c0_72], %246 {strides = array<i32>} : memref<2x128xf32, #tpu.memory_space<vmem>>, vector<2x128xf32>,
    } else {
    }
    %c0 = arith.constant 0 : index
    %c0_1 = arith.constant 0 : index
    %3 = vector.load %arg2[%c0, %c0_1] : memref<128x384xf32, #tpu.memory_space<vmem>>, vector<128x384xf32>
    %c0_2 = arith.constant 0 : index
    %c0_3 = arith.constant 0 : index
    %4 = vector.load %arg4[%c0_2, %c0_3] : memref<2x128xf32, #tpu.memory_space<vmem>>, vector<2x128xf32>
    %c0_4 = arith.constant 0 : index
    %c0_5 = arith.constant 0 : index
    %c0_6 = arith.constant 0 : index
    %5 = vector.load %arg1[%c0_4, %c0_5, %c0_6] : memref<2x8x384xf32, #tpu.memory_space<vmem>>, vector<2x1x384xf32>
    %6 = vector.shape_cast %5 : vector<2x1x384xf32> to vector<2x384xf32>
    %cst = arith.constant dense<0.000000e+00> : vector<2x384xf32>
    %7 = tpu.matmul %4, %3, %cst {dimension_numbers = #tpu.dot_dimension_numbers<[1], [0], [0], [1], [0, 0, 1, 1], [], []>} : vector<2x128xf32>, vector<128x384xf32>, vector<2x384xf32> -> vector<2x384xf32>
    %8 = vector.extract_strided_slice %6 {offsets = [0, 0], sizes = [2, 128], strides = [1, 1]} : vector<2x384xf32> to vector<2x128xf32>
    %9 = vector.extract_strided_slice %7 {offsets = [0, 0], sizes = [2, 128], strides = [1, 1]} : vector<2x384xf32> to vector<2x128xf32>
    %10 = arith.addf %8, %9 : vector<2x128xf32>
    %11 = arith.negf %10 : vector<2x128xf32>
    %12 = math.exp %11 : vector<2x128xf32>
    %cst_7 = arith.constant 1.000000e+00 : f32
    %13 = vector.broadcast %cst_7 : f32 to vector<2x128xf32>
    %14 = arith.addf %13, %12 : vector<2x128xf32>
    %15 = arith.divf %13, %14 : vector<2x128xf32>
    %16 = vector.extract_strided_slice %6 {offsets = [0, 128], sizes = [2, 128], strides = [1, 1]} : vector<2x384xf32> to vector<2x128xf32>
    %17 = vector.extract_strided_slice %7 {offsets = [0, 128], sizes = [2, 128], strides = [1, 1]} : vector<2x384xf32> to vector<2x128xf32>
    %18 = arith.addf %16, %17 : vector<2x128xf32>
    %19 = arith.negf %18 : vector<2x128xf32>
    %20 = math.exp %19 : vector<2x128xf32>
    %cst_8 = arith.constant 1.000000e+00 : f32
    %21 = vector.broadcast %cst_8 : f32 to vector<2x128xf32>
    %22 = arith.addf %21, %20 : vector<2x128xf32>
    %23 = arith.divf %21, %22 : vector<2x128xf32>
    %24 = vector.extract_strided_slice %6 {offsets = [0, 256], sizes = [2, 128], strides = [1, 1]} : vector<2x384xf32> to vector<2x128xf32>
    %25 = vector.extract_strided_slice %7 {offsets = [0, 256], sizes = [2, 128], strides = [1, 1]} : vector<2x384xf32> to vector<2x128xf32>
    %26 = arith.mulf %15, %25 : vector<2x128xf32>
    %27 = arith.addf %24, %26 : vector<2x128xf32>
    %28 = math.tanh %27 : vector<2x128xf32>
    %29 = arith.subf %4, %28 : vector<2x128xf32>
    %30 = arith.mulf %23, %29 : vector<2x128xf32>
    %31 = arith.addf %28, %30 : vector<2x128xf32>
    %c0_9 = arith.constant 0 : index
    %c0_10 = arith.constant 0 : index
    %c0_11 = arith.constant 0 : index
    %32 = vector.load %arg3[%c0_9, %c0_10, %c0_11] : memref<2x8x128xf32, #tpu.memory_space<vmem>>, vector<2x1x128xf32>
    %33 = vector.shape_cast %32 : vector<2x1x128xf32> to vector<2x128xf32>
    %34 = vector.shape_cast %31 : vector<2x128xf32> to vector<2x1x128xf32>
    tpu.vector_store %arg3[%c0_9, %c0_10, %c0_11], %34 {strides = array<i32>} : memref<2x8x128xf32, #tpu.memory_space<vmem>>, vector<2x1x128xf32>,
    %c0_12 = arith.constant 0 : index
    %c1 = arith.constant 1 : index
    %c0_13 = arith.constant 0 : index
    %35 = vector.load %arg1[%c0_12, %c1, %c0_13] : memref<2x8x384xf32, #tpu.memory_space<vmem>>, vector<2x1x384xf32>
    %36 = vector.shape_cast %35 : vector<2x1x384xf32> to vector<2x384xf32>
    %cst_14 = arith.constant dense<0.000000e+00> : vector<2x384xf32>
    %37 = tpu.matmul %31, %3, %cst_14 {dimension_numbers = #tpu.dot_dimension_numbers<[1], [0], [0], [1], [0, 0, 1, 1], [], []>} : vector<2x128xf32>, vector<128x384xf32>, vector<2x384xf32> -> vector<2x384xf32>
    %38 = vector.extract_strided_slice %36 {offsets = [0, 0], sizes = [2, 128], strides = [1, 1]} : vector<2x384xf32> to vector<2x128xf32>
    %39 = vector.extract_strided_slice %37 {offsets = [0, 0], sizes = [2, 128], strides = [1, 1]} : vector<2x384xf32> to vector<2x128xf32>
    %40 = arith.addf %38, %39 : vector<2x128xf32>
    %41 = arith.negf %40 : vector<2x128xf32>
    %42 = math.exp %41 : vector<2x128xf32>
    %cst_15 = arith.constant 1.000000e+00 : f32
    %43 = vector.broadcast %cst_15 : f32 to vector<2x128xf32>
    %44 = arith.addf %43, %42 : vector<2x128xf32>
    %45 = arith.divf %43, %44 : vector<2x128xf32>
    %46 = vector.extract_strided_slice %36 {offsets = [0, 128], sizes = [2, 128], strides = [1, 1]} : vector<2x384xf32> to vector<2x128xf32>
    %47 = vector.extract_strided_slice %37 {offsets = [0, 128], sizes = [2, 128], strides = [1, 1]} : vector<2x384xf32> to vector<2x128xf32>
    %48 = arith.addf %46, %47 : vector<2x128xf32>
    %49 = arith.negf %48 : vector<2x128xf32>
    %50 = math.exp %49 : vector<2x128xf32>
    %cst_16 = arith.constant 1.000000e+00 : f32
    %51 = vector.broadcast %cst_16 : f32 to vector<2x128xf32>
    %52 = arith.addf %51, %50 : vector<2x128xf32>
    %53 = arith.divf %51, %52 : vector<2x128xf32>
    %54 = vector.extract_strided_slice %36 {offsets = [0, 256], sizes = [2, 128], strides = [1, 1]} : vector<2x384xf32> to vector<2x128xf32>
    %55 = vector.extract_strided_slice %37 {offsets = [0, 256], sizes = [2, 128], strides = [1, 1]} : vector<2x384xf32> to vector<2x128xf32>
    %56 = arith.mulf %45, %55 : vector<2x128xf32>
    %57 = arith.addf %54, %56 : vector<2x128xf32>
    %58 = math.tanh %57 : vector<2x128xf32>
    %59 = arith.subf %31, %58 : vector<2x128xf32>
    %60 = arith.mulf %53, %59 : vector<2x128xf32>
    %61 = arith.addf %58, %60 : vector<2x128xf32>
    %c0_17 = arith.constant 0 : index
    %c1_18 = arith.constant 1 : index
    %c0_19 = arith.constant 0 : index
    %62 = vector.load %arg3[%c0_17, %c1_18, %c0_19] : memref<2x8x128xf32, #tpu.memory_space<vmem>>, vector<2x1x128xf32>
    %63 = vector.shape_cast %62 : vector<2x1x128xf32> to vector<2x128xf32>
    %64 = vector.shape_cast %61 : vector<2x128xf32> to vector<2x1x128xf32>
    tpu.vector_store %arg3[%c0_17, %c1_18, %c0_19], %64 {strides = array<i32>} : memref<2x8x128xf32, #tpu.memory_space<vmem>>, vector<2x1x128xf32>,
    %c0_20 = arith.constant 0 : index
    %c2 = arith.constant 2 : index
    %c0_21 = arith.constant 0 : index
    %65 = vector.load %arg1[%c0_20, %c2, %c0_21] : memref<2x8x384xf32, #tpu.memory_space<vmem>>, vector<2x1x384xf32>
    %66 = vector.shape_cast %65 : vector<2x1x384xf32> to vector<2x384xf32>
    %cst_22 = arith.constant dense<0.000000e+00> : vector<2x384xf32>
    %67 = tpu.matmul %61, %3, %cst_22 {dimension_numbers = #tpu.dot_dimension_numbers<[1], [0], [0], [1], [0, 0, 1, 1], [], []>} : vector<2x128xf32>, vector<128x384xf32>, vector<2x384xf32> -> vector<2x384xf32>
    %68 = vector.extract_strided_slice %66 {offsets = [0, 0], sizes = [2, 128], strides = [1, 1]} : vector<2x384xf32> to vector<2x128xf32>
    %69 = vector.extract_strided_slice %67 {offsets = [0, 0], sizes = [2, 128], strides = [1, 1]} : vector<2x384xf32> to vector<2x128xf32>
    %70 = arith.addf %68, %69 : vector<2x128xf32>
    %71 = arith.negf %70 : vector<2x128xf32>
    %72 = math.exp %71 : vector<2x128xf32>
    %cst_23 = arith.constant 1.000000e+00 : f32
    %73 = vector.broadcast %cst_23 : f32 to vector<2x128xf32>
    %74 = arith.addf %73, %72 : vector<2x128xf32>
    %75 = arith.divf %73, %74 : vector<2x128xf32>
    %76 = vector.extract_strided_slice %66 {offsets = [0, 128], sizes = [2, 128], strides = [1, 1]} : vector<2x384xf32> to vector<2x128xf32>
    %77 = vector.extract_strided_slice %67 {offsets = [0, 128], sizes = [2, 128], strides = [1, 1]} : vector<2x384xf32> to vector<2x128xf32>
    %78 = arith.addf %76, %77 : vector<2x128xf32>
    %79 = arith.negf %78 : vector<2x128xf32>
    %80 = math.exp %79 : vector<2x128xf32>
    %cst_24 = arith.constant 1.000000e+00 : f32
    %81 = vector.broadcast %cst_24 : f32 to vector<2x128xf32>
    %82 = arith.addf %81, %80 : vector<2x128xf32>
    %83 = arith.divf %81, %82 : vector<2x128xf32>
    %84 = vector.extract_strided_slice %66 {offsets = [0, 256], sizes = [2, 128], strides = [1, 1]} : vector<2x384xf32> to vector<2x128xf32>
    %85 = vector.extract_strided_slice %67 {offsets = [0, 256], sizes = [2, 128], strides = [1, 1]} : vector<2x384xf32> to vector<2x128xf32>
    %86 = arith.mulf %75, %85 : vector<2x128xf32>
    %87 = arith.addf %84, %86 : vector<2x128xf32>
    %88 = math.tanh %87 : vector<2x128xf32>
    %89 = arith.subf %61, %88 : vector<2x128xf32>
    %90 = arith.mulf %83, %89 : vector<2x128xf32>
    %91 = arith.addf %88, %90 : vector<2x128xf32>
    %c0_25 = arith.constant 0 : index
    %c2_26 = arith.constant 2 : index
    %c0_27 = arith.constant 0 : index
    %92 = vector.load %arg3[%c0_25, %c2_26, %c0_27] : memref<2x8x128xf32, #tpu.memory_space<vmem>>, vector<2x1x128xf32>
    %93 = vector.shape_cast %92 : vector<2x1x128xf32> to vector<2x128xf32>
    %94 = vector.shape_cast %91 : vector<2x128xf32> to vector<2x1x128xf32>
    tpu.vector_store %arg3[%c0_25, %c2_26, %c0_27], %94 {strides = array<i32>} : memref<2x8x128xf32, #tpu.memory_space<vmem>>, vector<2x1x128xf32>,
    %c0_28 = arith.constant 0 : index
    %c3 = arith.constant 3 : index
    %c0_29 = arith.constant 0 : index
    %95 = vector.load %arg1[%c0_28, %c3, %c0_29] : memref<2x8x384xf32, #tpu.memory_space<vmem>>, vector<2x1x384xf32>
    %96 = vector.shape_cast %95 : vector<2x1x384xf32> to vector<2x384xf32>
    %cst_30 = arith.constant dense<0.000000e+00> : vector<2x384xf32>
    %97 = tpu.matmul %91, %3, %cst_30 {dimension_numbers = #tpu.dot_dimension_numbers<[1], [0], [0], [1], [0, 0, 1, 1], [], []>} : vector<2x128xf32>, vector<128x384xf32>, vector<2x384xf32> -> vector<2x384xf32>
    %98 = vector.extract_strided_slice %96 {offsets = [0, 0], sizes = [2, 128], strides = [1, 1]} : vector<2x384xf32> to vector<2x128xf32>
    %99 = vector.extract_strided_slice %97 {offsets = [0, 0], sizes = [2, 128], strides = [1, 1]} : vector<2x384xf32> to vector<2x128xf32>
    %100 = arith.addf %98, %99 : vector<2x128xf32>
    %101 = arith.negf %100 : vector<2x128xf32>
    %102 = math.exp %101 : vector<2x128xf32>
    %cst_31 = arith.constant 1.000000e+00 : f32
    %103 = vector.broadcast %cst_31 : f32 to vector<2x128xf32>
    %104 = arith.addf %103, %102 : vector<2x128xf32>
    %105 = arith.divf %103, %104 : vector<2x128xf32>
    %106 = vector.extract_strided_slice %96 {offsets = [0, 128], sizes = [2, 128], strides = [1, 1]} : vector<2x384xf32> to vector<2x128xf32>
    %107 = vector.extract_strided_slice %97 {offsets = [0, 128], sizes = [2, 128], strides = [1, 1]} : vector<2x384xf32> to vector<2x128xf32>
    %108 = arith.addf %106, %107 : vector<2x128xf32>
    %109 = arith.negf %108 : vector<2x128xf32>
    %110 = math.exp %109 : vector<2x128xf32>
    %cst_32 = arith.constant 1.000000e+00 : f32
    %111 = vector.broadcast %cst_32 : f32 to vector<2x128xf32>
    %112 = arith.addf %111, %110 : vector<2x128xf32>
    %113 = arith.divf %111, %112 : vector<2x128xf32>
    %114 = vector.extract_strided_slice %96 {offsets = [0, 256], sizes = [2, 128], strides = [1, 1]} : vector<2x384xf32> to vector<2x128xf32>
    %115 = vector.extract_strided_slice %97 {offsets = [0, 256], sizes = [2, 128], strides = [1, 1]} : vector<2x384xf32> to vector<2x128xf32>
    %116 = arith.mulf %105, %115 : vector<2x128xf32>
    %117 = arith.addf %114, %116 : vector<2x128xf32>
    %118 = math.tanh %117 : vector<2x128xf32>
    %119 = arith.subf %91, %118 : vector<2x128xf32>
    %120 = arith.mulf %113, %119 : vector<2x128xf32>
    %121 = arith.addf %118, %120 : vector<2x128xf32>
    %c0_33 = arith.constant 0 : index
    %c3_34 = arith.constant 3 : index
    %c0_35 = arith.constant 0 : index
    %122 = vector.load %arg3[%c0_33, %c3_34, %c0_35] : memref<2x8x128xf32, #tpu.memory_space<vmem>>, vector<2x1x128xf32>
    %123 = vector.shape_cast %122 : vector<2x1x128xf32> to vector<2x128xf32>
    %124 = vector.shape_cast %121 : vector<2x128xf32> to vector<2x1x128xf32>
    tpu.vector_store %arg3[%c0_33, %c3_34, %c0_35], %124 {strides = array<i32>} : memref<2x8x128xf32, #tpu.memory_space<vmem>>, vector<2x1x128xf32>,
    %c0_36 = arith.constant 0 : index
    %c4 = arith.constant 4 : index
    %c0_37 = arith.constant 0 : index
    %125 = vector.load %arg1[%c0_36, %c4, %c0_37] : memref<2x8x384xf32, #tpu.memory_space<vmem>>, vector<2x1x384xf32>
    %126 = vector.shape_cast %125 : vector<2x1x384xf32> to vector<2x384xf32>
    %cst_38 = arith.constant dense<0.000000e+00> : vector<2x384xf32>
    %127 = tpu.matmul %121, %3, %cst_38 {dimension_numbers = #tpu.dot_dimension_numbers<[1], [0], [0], [1], [0, 0, 1, 1], [], []>} : vector<2x128xf32>, vector<128x384xf32>, vector<2x384xf32> -> vector<2x384xf32>
    %128 = vector.extract_strided_slice %126 {offsets = [0, 0], sizes = [2, 128], strides = [1, 1]} : vector<2x384xf32> to vector<2x128xf32>
    %129 = vector.extract_strided_slice %127 {offsets = [0, 0], sizes = [2, 128], strides = [1, 1]} : vector<2x384xf32> to vector<2x128xf32>
    %130 = arith.addf %128, %129 : vector<2x128xf32>
    %131 = arith.negf %130 : vector<2x128xf32>
    %132 = math.exp %131 : vector<2x128xf32>
    %cst_39 = arith.constant 1.000000e+00 : f32
    %133 = vector.broadcast %cst_39 : f32 to vector<2x128xf32>
    %134 = arith.addf %133, %132 : vector<2x128xf32>
    %135 = arith.divf %133, %134 : vector<2x128xf32>
    %136 = vector.extract_strided_slice %126 {offsets = [0, 128], sizes = [2, 128], strides = [1, 1]} : vector<2x384xf32> to vector<2x128xf32>
    %137 = vector.extract_strided_slice %127 {offsets = [0, 128], sizes = [2, 128], strides = [1, 1]} : vector<2x384xf32> to vector<2x128xf32>
    %138 = arith.addf %136, %137 : vector<2x128xf32>
    %139 = arith.negf %138 : vector<2x128xf32>
    %140 = math.exp %139 : vector<2x128xf32>
    %cst_40 = arith.constant 1.000000e+00 : f32
    %141 = vector.broadcast %cst_40 : f32 to vector<2x128xf32>
    %142 = arith.addf %141, %140 : vector<2x128xf32>
    %143 = arith.divf %141, %142 : vector<2x128xf32>
    %144 = vector.extract_strided_slice %126 {offsets = [0, 256], sizes = [2, 128], strides = [1, 1]} : vector<2x384xf32> to vector<2x128xf32>
    %145 = vector.extract_strided_slice %127 {offsets = [0, 256], sizes = [2, 128], strides = [1, 1]} : vector<2x384xf32> to vector<2x128xf32>
    %146 = arith.mulf %135, %145 : vector<2x128xf32>
    %147 = arith.addf %144, %146 : vector<2x128xf32>
    %148 = math.tanh %147 : vector<2x128xf32>
    %149 = arith.subf %121, %148 : vector<2x128xf32>
    %150 = arith.mulf %143, %149 : vector<2x128xf32>
    %151 = arith.addf %148, %150 : vector<2x128xf32>
    %c0_41 = arith.constant 0 : index
    %c4_42 = arith.constant 4 : index
    %c0_43 = arith.constant 0 : index
    %152 = vector.load %arg3[%c0_41, %c4_42, %c0_43] : memref<2x8x128xf32, #tpu.memory_space<vmem>>, vector<2x1x128xf32>
    %153 = vector.shape_cast %152 : vector<2x1x128xf32> to vector<2x128xf32>
    %154 = vector.shape_cast %151 : vector<2x128xf32> to vector<2x1x128xf32>
    tpu.vector_store %arg3[%c0_41, %c4_42, %c0_43], %154 {strides = array<i32>} : memref<2x8x128xf32, #tpu.memory_space<vmem>>, vector<2x1x128xf32>,
    %c0_44 = arith.constant 0 : index
    %c5 = arith.constant 5 : index
    %c0_45 = arith.constant 0 : index
    %155 = vector.load %arg1[%c0_44, %c5, %c0_45] : memref<2x8x384xf32, #tpu.memory_space<vmem>>, vector<2x1x384xf32>
    %156 = vector.shape_cast %155 : vector<2x1x384xf32> to vector<2x384xf32>
    %cst_46 = arith.constant dense<0.000000e+00> : vector<2x384xf32>
    %157 = tpu.matmul %151, %3, %cst_46 {dimension_numbers = #tpu.dot_dimension_numbers<[1], [0], [0], [1], [0, 0, 1, 1], [], []>} : vector<2x128xf32>, vector<128x384xf32>, vector<2x384xf32> -> vector<2x384xf32>
    %158 = vector.extract_strided_slice %156 {offsets = [0, 0], sizes = [2, 128], strides = [1, 1]} : vector<2x384xf32> to vector<2x128xf32>
    %159 = vector.extract_strided_slice %157 {offsets = [0, 0], sizes = [2, 128], strides = [1, 1]} : vector<2x384xf32> to vector<2x128xf32>
    %160 = arith.addf %158, %159 : vector<2x128xf32>
    %161 = arith.negf %160 : vector<2x128xf32>
    %162 = math.exp %161 : vector<2x128xf32>
    %cst_47 = arith.constant 1.000000e+00 : f32
    %163 = vector.broadcast %cst_47 : f32 to vector<2x128xf32>
    %164 = arith.addf %163, %162 : vector<2x128xf32>
    %165 = arith.divf %163, %164 : vector<2x128xf32>
    %166 = vector.extract_strided_slice %156 {offsets = [0, 128], sizes = [2, 128], strides = [1, 1]} : vector<2x384xf32> to vector<2x128xf32>
    %167 = vector.extract_strided_slice %157 {offsets = [0, 128], sizes = [2, 128], strides = [1, 1]} : vector<2x384xf32> to vector<2x128xf32>
    %168 = arith.addf %166, %167 : vector<2x128xf32>
    %169 = arith.negf %168 : vector<2x128xf32>
    %170 = math.exp %169 : vector<2x128xf32>
    %cst_48 = arith.constant 1.000000e+00 : f32
    %171 = vector.broadcast %cst_48 : f32 to vector<2x128xf32>
    %172 = arith.addf %171, %170 : vector<2x128xf32>
    %173 = arith.divf %171, %172 : vector<2x128xf32>
    %174 = vector.extract_strided_slice %156 {offsets = [0, 256], sizes = [2, 128], strides = [1, 1]} : vector<2x384xf32> to vector<2x128xf32>
    %175 = vector.extract_strided_slice %157 {offsets = [0, 256], sizes = [2, 128], strides = [1, 1]} : vector<2x384xf32> to vector<2x128xf32>
    %176 = arith.mulf %165, %175 : vector<2x128xf32>
    %177 = arith.addf %174, %176 : vector<2x128xf32>
    %178 = math.tanh %177 : vector<2x128xf32>
    %179 = arith.subf %151, %178 : vector<2x128xf32>
    %180 = arith.mulf %173, %179 : vector<2x128xf32>
    %181 = arith.addf %178, %180 : vector<2x128xf32>
    %c0_49 = arith.constant 0 : index
    %c5_50 = arith.constant 5 : index
    %c0_51 = arith.constant 0 : index
    %182 = vector.load %arg3[%c0_49, %c5_50, %c0_51] : memref<2x8x128xf32, #tpu.memory_space<vmem>>, vector<2x1x128xf32>
    %183 = vector.shape_cast %182 : vector<2x1x128xf32> to vector<2x128xf32>
    %184 = vector.shape_cast %181 : vector<2x128xf32> to vector<2x1x128xf32>
    tpu.vector_store %arg3[%c0_49, %c5_50, %c0_51], %184 {strides = array<i32>} : memref<2x8x128xf32, #tpu.memory_space<vmem>>, vector<2x1x128xf32>,
    %c0_52 = arith.constant 0 : index
    %c6 = arith.constant 6 : index
    %c0_53 = arith.constant 0 : index
    %185 = vector.load %arg1[%c0_52, %c6, %c0_53] : memref<2x8x384xf32, #tpu.memory_space<vmem>>, vector<2x1x384xf32>
    %186 = vector.shape_cast %185 : vector<2x1x384xf32> to vector<2x384xf32>
    %cst_54 = arith.constant dense<0.000000e+00> : vector<2x384xf32>
    %187 = tpu.matmul %181, %3, %cst_54 {dimension_numbers = #tpu.dot_dimension_numbers<[1], [0], [0], [1], [0, 0, 1, 1], [], []>} : vector<2x128xf32>, vector<128x384xf32>, vector<2x384xf32> -> vector<2x384xf32>
    %188 = vector.extract_strided_slice %186 {offsets = [0, 0], sizes = [2, 128], strides = [1, 1]} : vector<2x384xf32> to vector<2x128xf32>
    %189 = vector.extract_strided_slice %187 {offsets = [0, 0], sizes = [2, 128], strides = [1, 1]} : vector<2x384xf32> to vector<2x128xf32>
    %190 = arith.addf %188, %189 : vector<2x128xf32>
    %191 = arith.negf %190 : vector<2x128xf32>
    %192 = math.exp %191 : vector<2x128xf32>
    %cst_55 = arith.constant 1.000000e+00 : f32
    %193 = vector.broadcast %cst_55 : f32 to vector<2x128xf32>
    %194 = arith.addf %193, %192 : vector<2x128xf32>
    %195 = arith.divf %193, %194 : vector<2x128xf32>
    %196 = vector.extract_strided_slice %186 {offsets = [0, 128], sizes = [2, 128], strides = [1, 1]} : vector<2x384xf32> to vector<2x128xf32>
    %197 = vector.extract_strided_slice %187 {offsets = [0, 128], sizes = [2, 128], strides = [1, 1]} : vector<2x384xf32> to vector<2x128xf32>
    %198 = arith.addf %196, %197 : vector<2x128xf32>
    %199 = arith.negf %198 : vector<2x128xf32>
    %200 = math.exp %199 : vector<2x128xf32>
    %cst_56 = arith.constant 1.000000e+00 : f32
    %201 = vector.broadcast %cst_56 : f32 to vector<2x128xf32>
    %202 = arith.addf %201, %200 : vector<2x128xf32>
    %203 = arith.divf %201, %202 : vector<2x128xf32>
    %204 = vector.extract_strided_slice %186 {offsets = [0, 256], sizes = [2, 128], strides = [1, 1]} : vector<2x384xf32> to vector<2x128xf32>
    %205 = vector.extract_strided_slice %187 {offsets = [0, 256], sizes = [2, 128], strides = [1, 1]} : vector<2x384xf32> to vector<2x128xf32>
    %206 = arith.mulf %195, %205 : vector<2x128xf32>
    %207 = arith.addf %204, %206 : vector<2x128xf32>
    %208 = math.tanh %207 : vector<2x128xf32>
    %209 = arith.subf %181, %208 : vector<2x128xf32>
    %210 = arith.mulf %203, %209 : vector<2x128xf32>
    %211 = arith.addf %208, %210 : vector<2x128xf32>
    %c0_57 = arith.constant 0 : index
    %c6_58 = arith.constant 6 : index
    %c0_59 = arith.constant 0 : index
    %212 = vector.load %arg3[%c0_57, %c6_58, %c0_59] : memref<2x8x128xf32, #tpu.memory_space<vmem>>, vector<2x1x128xf32>
    %213 = vector.shape_cast %212 : vector<2x1x128xf32> to vector<2x128xf32>
    %214 = vector.shape_cast %211 : vector<2x128xf32> to vector<2x1x128xf32>
    tpu.vector_store %arg3[%c0_57, %c6_58, %c0_59], %214 {strides = array<i32>} : memref<2x8x128xf32, #tpu.memory_space<vmem>>, vector<2x1x128xf32>,
    %c0_60 = arith.constant 0 : index
    %c7 = arith.constant 7 : index
    %c0_61 = arith.constant 0 : index
    %215 = vector.load %arg1[%c0_60, %c7, %c0_61] : memref<2x8x384xf32, #tpu.memory_space<vmem>>, vector<2x1x384xf32>
    %216 = vector.shape_cast %215 : vector<2x1x384xf32> to vector<2x384xf32>
    %cst_62 = arith.constant dense<0.000000e+00> : vector<2x384xf32>
    %217 = tpu.matmul %211, %3, %cst_62 {dimension_numbers = #tpu.dot_dimension_numbers<[1], [0], [0], [1], [0, 0, 1, 1], [], []>} : vector<2x128xf32>, vector<128x384xf32>, vector<2x384xf32> -> vector<2x384xf32>
    %218 = vector.extract_strided_slice %216 {offsets = [0, 0], sizes = [2, 128], strides = [1, 1]} : vector<2x384xf32> to vector<2x128xf32>
    %219 = vector.extract_strided_slice %217 {offsets = [0, 0], sizes = [2, 128], strides = [1, 1]} : vector<2x384xf32> to vector<2x128xf32>
    %220 = arith.addf %218, %219 : vector<2x128xf32>
    %221 = arith.negf %220 : vector<2x128xf32>
    %222 = math.exp %221 : vector<2x128xf32>
    %cst_63 = arith.constant 1.000000e+00 : f32
    %223 = vector.broadcast %cst_63 : f32 to vector<2x128xf32>
    %224 = arith.addf %223, %222 : vector<2x128xf32>
    %225 = arith.divf %223, %224 : vector<2x128xf32>
    %226 = vector.extract_strided_slice %216 {offsets = [0, 128], sizes = [2, 128], strides = [1, 1]} : vector<2x384xf32> to vector<2x128xf32>
    %227 = vector.extract_strided_slice %217 {offsets = [0, 128], sizes = [2, 128], strides = [1, 1]} : vector<2x384xf32> to vector<2x128xf32>
    %228 = arith.addf %226, %227 : vector<2x128xf32>
    %229 = arith.negf %228 : vector<2x128xf32>
    %230 = math.exp %229 : vector<2x128xf32>
    %cst_64 = arith.constant 1.000000e+00 : f32
    %231 = vector.broadcast %cst_64 : f32 to vector<2x128xf32>
    %232 = arith.addf %231, %230 : vector<2x128xf32>
    %233 = arith.divf %231, %232 : vector<2x128xf32>
    %234 = vector.extract_strided_slice %216 {offsets = [0, 256], sizes = [2, 128], strides = [1, 1]} : vector<2x384xf32> to vector<2x128xf32>
    %235 = vector.extract_strided_slice %217 {offsets = [0, 256], sizes = [2, 128], strides = [1, 1]} : vector<2x384xf32> to vector<2x128xf32>
    %236 = arith.mulf %225, %235 : vector<2x128xf32>
    %237 = arith.addf %234, %236 : vector<2x128xf32>
    %238 = math.tanh %237 : vector<2x128xf32>
    %239 = arith.subf %211, %238 : vector<2x128xf32>
    %240 = arith.mulf %233, %239 : vector<2x128xf32>
    %241 = arith.addf %238, %240 : vector<2x128xf32>
    %c0_65 = arith.constant 0 : index
    %c7_66 = arith.constant 7 : index
    %c0_67 = arith.constant 0 : index
    %242 = vector.load %arg3[%c0_65, %c7_66, %c0_67] : memref<2x8x128xf32, #tpu.memory_space<vmem>>, vector<2x1x128xf32>
    %243 = vector.shape_cast %242 : vector<2x1x128xf32> to vector<2x128xf32>
    %244 = vector.shape_cast %241 : vector<2x128xf32> to vector<2x1x128xf32>
    tpu.vector_store %arg3[%c0_65, %c7_66, %c0_67], %244 {strides = array<i32>} : memref<2x8x128xf32, #tpu.memory_space<vmem>>, vector<2x1x128xf32>,
    %c0_68 = arith.constant 0 : index
    %c0_69 = arith.constant 0 : index
    %245 = vector.load %arg4[%c0_68, %c0_69] : memref<2x128xf32, #tpu.memory_space<vmem>>, vector<2x128xf32>
    tpu.vector_store %arg4[%c0_68, %c0_69], %241 {strides = array<i32>} : memref<2x128xf32, #tpu.memory_space<vmem>>, vector<2x128xf32>,
    return
  }
  func.func @transform_0(%arg0: i32) -> (i32, i32, i32) {
    %c0_i32 = arith.constant 0 : i32
    %c0_i32_0 = arith.constant 0 : i32
    %c0_i32_1 = arith.constant 0 : i32
    return %c0_i32, %arg0, %c0_i32_0 : i32, i32, i32
  }
  func.func @transform_1(%arg0: i32) -> (i32, i32) {
    %c0_i32 = arith.constant 0 : i32
    %c0_i32_0 = arith.constant 0 : i32
    %c0_i32_1 = arith.constant 0 : i32
    return %c0_i32, %c0_i32_0 : i32, i32
  }
  func.func @transform_2(%arg0: i32) -> (i32, i32, i32) {
    %c0_i32 = arith.constant 0 : i32
    %c0_i32_0 = arith.constant 0 : i32
    %c0_i32_1 = arith.constant 0 : i32
    return %c0_i32, %arg0, %c0_i32_0 : i32, i32, i32
  }
}

</mosaic_0001>

<bundles_post_ra>
// kernel: ps_rnn_dec_forward.1
= control target key start
LH: loop header
LB: loop body
LE: loop exit
PB: predicated region body
PF: predicated region fallthrough
CT: control target
= control target key end

     0   :  { %v3547_v7 = vmov 0.0|0.0   ;;  %v3548_v8 = vmov 0.0   ;;  %vm3549_vm0 = vmmov 0   ;;  %s4271_s0 = inlined_call_operand.vmem [shape: f32[2,8,384], index: 0, kind: input, shape index: {}]   ;;  %s4272_s1 = inlined_call_operand.vmem [shape: f32[128,384], index: 1, kind: input, shape index: {}]   ;;  %s4273_s2 = inlined_call_operand.hbm [shape: f32[2,8,128], index: 2, kind: output, shape index: {}]  }
   0x1   :  { %v18_v0 = vld [vmem:[%s4272_s1 + $0x8] sm:$0xff]  ;;  %v21_v1 = vld [vmem:[%s4272_s1 + $0x20] sm:$0xff]  ;;  %v20_v4 = vld [vmem:[%s4272_s1 + $0x18] sm:$0xff]  ;;  %2940 = vmatprep.subr.bf16.mxu1 %v3547_v7  ;;  %133 = vmatprep.mubr.f32.mxu0 %v3548_v8  ;;  %16 = vst [vmem:[#allocation2] sm:$0x3] %v3548_v8 }
   0x2   :  { %v17_v2 = vld [vmem:[%s4272_s1] sm:$0xff]  ;;  %v3578_v3 = vpack.c.bf16 %v21_v1, %v18_v0  ;;  %v24_v5 = vld [vmem:[%s4272_s1 + $0x38] sm:$0xff]  ;;  %v27_v6 = vld [vmem:[%s4272_s1 + $0x50] sm:$0xff]  ;;  %2660 = vmatprep.mubr.msk.f32.mxu1 %vm3549_vm0, %v3548_v8 }
   0x3   :  { %v3592_v9 = vpack.c.bf16 %v20_v4, %v17_v2  ;;  %v3594_v10 = vpack.c.bf16 %v27_v6, %v24_v5  ;;  %v23_v11 = vld [vmem:[%s4272_s1 + $0x30] sm:$0xff]  ;;  %v26_v12 = vld [vmem:[%s4272_s1 + $0x48] sm:$0xff]  ;;  %v33_v14 = vld [vmem:[%s4272_s1 + $0x80] sm:$0xff] }
   0x4   :  { %v30_v13 = vld [vmem:[%s4272_s1 + $0x68] sm:$0xff]  ;;  %2909 = vmatprep.subr.bf16.mxu0 %v3578_v3  ;;  %v3612_v15 = vpack.c.bf16 %v26_v12, %v23_v11  ;;  %v29_v17 = vld [vmem:[%s4272_s1 + $0x60] sm:$0xff]  ;;  %v32_v18 = vld [vmem:[%s4272_s1 + $0x78] sm:$0xff] }
   0x5   :  { %2911 = vmatpush1.bf16.msra.mxu0 %v3592_v9  ;;  %v3615_v16 = vpack.c.bf16 %v33_v14, %v30_v13  ;;  %v36_v19 = vld [vmem:[%s4272_s1 + $0x98] sm:$0xff]  ;;  %v39_v20 = vld [vmem:[%s4272_s1 + $0xb0] sm:$0xff]  ;;  %v3630_v21 = vpack.c.bf16 %v32_v18, %v29_v17  ;;  %v38_v24 = vld [vmem:[%s4272_s1 + $0xa8] sm:$0xff] }
   0x6   :  { %2913 = vmatprep.subr.bf16.mxu0 %v3594_v10  ;;  %v3633_v22 = vpack.c.bf16 %v39_v20, %v36_v19  ;;  %v35_v23 = vld [vmem:[%s4272_s1 + $0x90] sm:$0xff]  ;;  %v42_v25 = vld [vmem:[%s4272_s1 + $0xc8] sm:$0xff]  ;;  %v45_v26 = vld [vmem:[%s4272_s1 + $0xe0] sm:$0xff] }
   0x7   :  { %v19_v27 = vld [vmem:[%s4272_s1 + $0x10] sm:$0xff]  ;;  %v22_v28 = vld [vmem:[%s4272_s1 + $0x28] sm:$0xff]  ;;  %v25_v30 = vld [vmem:[%s4272_s1 + $0x40] sm:$0xff]  ;;  %v3659_v31 = vpack.c.bf16 %v38_v24, %v35_v23  ;;  %v3665_v33 = vpack.c.bf16 %v45_v26, %v42_v25 }
   0x8   :  { %v3653_v29 = vpack.c.bf16 %v22_v28, %v19_v27  ;;  %v28_v32 = vld [vmem:[%s4272_s1 + $0x58] sm:$0xff]  ;;  %v41_v34 = vld [vmem:[%s4272_s1 + $0xc0] sm:$0xff]  ;;  %v51_v38 = vld [vmem:[%s4272_s1 + $0x110] sm:$0xff] }
   0x9   :  { %2915 = vmatpush1.bf16.msra.mxu0 %v3612_v15  ;;  %v44_v35 = vld [vmem:[%s4272_s1 + $0xd8] sm:$0xff]  ;;  %v3677_v37 = vpack.c.bf16 %v28_v32, %v25_v30  ;;  %v31_v39 = vld [vmem:[%s4272_s1 + $0x70] sm:$0xff]  ;;  %v34_v40 = vld [vmem:[%s4272_s1 + $0x88] sm:$0xff] }
   0xa   :  { %2917 = vmatprep.subr.bf16.mxu0 %v3615_v16  ;;  %v48_v36 = vld [vmem:[%s4272_s1 + $0xf8] sm:$0xff]  ;;  %2942 = vmatpush3.bf16.msra.mxu1 %v3653_v29  ;;  %v3690_v41 = vpack.c.bf16 %v44_v35, %v41_v34 }
   0xb   :  { %2943 = vmatprep.subr.bf16.mxu1 %v3547_v7 }
   0xd   :  { %2919 = vmatpush1.bf16.msra.mxu0 %v3630_v21 }
   0xe   :  { %2921 = vmatprep.subr.bf16.mxu0 %v3633_v22 }
  0x11   :  { %2923 = vmatpush1.bf16.msra.mxu0 %v3659_v31 }
  0x12   :  { %7 = vsyncpa [#allocation4], 0  ;;  %2925 = vmatprep.subr.bf16.mxu0 %v3665_v33  ;;  %v3693_v42 = vpack.c.bf16 %v51_v38, %v48_v36  ;;  %v47_v43 = vld [vmem:[%s4272_s1 + $0xf0] sm:$0xff]  ;;  %v50_v44 = vld [vmem:[%s4272_s1 + $0x108] sm:$0xff]  ;;  %2945 = vmatpush3.bf16.msra.mxu1 %v3677_v37  ;;  %v3705_v46 = vpack.c.bf16 %v34_v40, %v31_v39  ;;  %v3550_v18 = vmov 1966171168   ;;  %v214_v20 = vlaneseq }
  0x13   :  { %v54_v45 = vld [vmem:[%s4272_s1 + $0x128] sm:$0xff]  ;;  %v57_v47 = vld [vmem:[%s4272_s1 + $0x140] sm:$0xff]  ;;  %2946 = vmatprep.subr.bf16.mxu1 %v3547_v7  ;;  %v40_v49 = vld [vmem:[%s4272_s1 + $0xb8] sm:$0xff]  ;;  %v3718_v50 = vpack.c.bf16 %v50_v44, %v47_v43  ;;  %v212_v19 = vunpack.c.l.s4 %v3550_v18 }
  0x14   :  { %v37_v48 = vld [vmem:[%s4272_s1 + $0xa0] sm:$0xff]  ;;  %v3721_v51 = vpack.c.bf16 %v57_v47, %v54_v45  ;;  %v56_v53 = vld [vmem:[%s4272_s1 + $0x138] sm:$0xff]  ;;  %v63_v56 = vld [vmem:[%s4272_s1 + $0x170] sm:$0xff]  ;;  %v215_v24 = vshrl.u32 %v214_v20, 7 }
  0x15   :  { %2927 = vmatpush1.bf16.msra.mxu0 %v3690_v41  ;;  %v53_v52 = vld [vmem:[%s4272_s1 + $0x120] sm:$0xff]  ;;  %v60_v54 = vld [vmem:[%s4272_s1 + $0x158] sm:$0xff]  ;;  %v3733_v55 = vpack.c.bf16 %v40_v49, %v37_v48  ;;  %v43_v57 = vld [vmem:[%s4272_s1 + $0xd0] sm:$0xff]  ;;  %v213_v23 = vunpack.c.0.s8 %v212_v19 }
  0x16   :  { %2929 = vmatprep.subr.bf16.mxu0 %v3693_v42  ;;  %2948 = vmatpush3.bf16.msra.mxu1 %v3705_v46  ;;  %v46_v58 = vld [vmem:[%s4272_s1 + $0xe8] sm:$0xff]  ;;  %v3746_v59 = vpack.c.bf16 %v56_v53, %v53_v52  ;;  %v3749_v60 = vpack.c.bf16 %v63_v56, %v60_v54  ;;  %v59_v61 = vld [vmem:[%s4272_s1 + $0x150] sm:$0xff]  ;;  %v49_v0 = vld [vmem:[%s4272_s1 + $0x100] sm:$0xff] }
  0x17   :  { %2949 = vmatprep.subr.bf16.mxu1 %v3547_v7  ;;  %v62_v62 = vld [vmem:[%s4272_s1 + $0x168] sm:$0xff]  ;;  %v3758_v63 = vpack.c.bf16 %v46_v58, %v43_v57  ;;  %v52_v1 = vld [vmem:[%s4272_s1 + $0x118] sm:$0xff]  ;;  %v55_v5 = vld [vmem:[%s4272_s1 + $0x130] sm:$0xff]  ;;  %v3838_v25 = vsub.s32 %v213_v23, %v215_v24 }
  0x18   :  { %v3768_v2 = vpack.c.bf16 %v62_v62, %v59_v61  ;;  %v3772_v4 = vpack.c.bf16 %v52_v1, %v49_v0  ;;  %v58_v6 = vld [vmem:[%s4272_s1 + $0x148] sm:$0xff]  ;;  %v3782_v11 = vld [vmem:[#allocation2] sm:$0x3]  ;;  %v64_v14 = vld [vmem:[%s4272_s1 + $0x178] sm:$0xff] }
  0x19   :  { %2931 = vmatpush1.bf16.msra.mxu0 %v3718_v50  ;;  %v3785_v12 = vpack.c.bf16 %v58_v6, %v55_v5  ;;  %v61_v13 = vld [vmem:[%s4272_s1 + $0x160] sm:$0xff] }
  0x1a   :  { %2933 = vmatprep.subr.bf16.mxu0 %v3721_v51  ;;  %2951 = vmatpush3.bf16.msra.mxu1 %v3733_v55  ;;  %v3799_v17 = vpack.c.bf16 %v64_v14, %v61_v13  ;;  %v66_v30 = vld [vmem:[%s4271_s0] ss:$8 sm:$0x7] }
  0x1b   :  { %2952 = vmatprep.subr.bf16.mxu1 %v3547_v7  ;;  %v2444_v35 = vld [vmem:[%s4271_s0 + $0x18] ss:$8 sm:$0x7]  ;;  %v251_v56 = vrot.slane %v66_v30, 1  ;;  %v321_v18 = vrot.slane %v66_v30, 2 }
  0x1c   :  { %v252_v61 = vrot.slane %v2444_v35, 1  ;;  %v322_v24 = vrot.slane %v2444_v35, 2 }
  0x1d   :  { %2935 = vmatpush1.bf16.msra.mxu0 %v3746_v59 }
  0x1e   :  { %2937 = vmatprep.subr.bf16.mxu0 %v3749_v60  ;;  %2954 = vmatpush3.bf16.msra.mxu1 %v3758_v63 }
  0x1f   :  { %2955 = vmatprep.subr.bf16.mxu1 %v3547_v7 }
  0x21   :  { %2939 = vmatpush1.bf16.msra.mxu0 %v3768_v2 }
  0x22   :  { %2957 = vmatpush3.bf16.msra.mxu1 %v3772_v4  ;;  %2965 = vmatprep.subr.bf16.mxu0 %v3578_v3 }
  0x23   :  { %2958 = vmatprep.subr.bf16.mxu1 %v3547_v7 }
  0x24   :  { %134 = vmatmul.mubr.f32.vlgmr.msra.gmra.mrb[0].mxu0 %v3782_v11 }
  0x25   :  { %2967 = vmatpush1.bf16.msra.mxu0 %v3592_v9  ;;  %465 = vmatprep.mubr.f32.mxu0 %v3548_v8 }
  0x26   :  { %2960 = vmatpush3.bf16.msra.mxu1 %v3785_v12  ;;  %2969 = vmatprep.subr.bf16.mxu0 %v3594_v10 }
  0x27   :  { %2961 = vmatprep.subr.bf16.mxu1 %v3547_v7 }
  0x29   :  { %2971 = vmatpush1.bf16.msra.mxu0 %v3612_v15 }
  0x2a   :  { %2963 = vmatpush3.bf16.msra.mxu1 %v3799_v17  ;;  %2973 = vmatprep.subr.bf16.mxu0 %v3615_v16 }
  0x2b   :  { %2996 = vmatprep.subr.bf16.mxu1 %v3547_v7 }
  0x2d   :  { %2661 = vmatmul.mubr.f32.vlgmr.msra.gmra.mrb[0].mxu1 %v3782_v11  ;;  %2975 = vmatpush1.bf16.msra.mxu0 %v3630_v21 }
  0x2e   :  { %2998 = vmatpush3.bf16.msra.mxu1 %v3653_v29  ;;  %2977 = vmatprep.subr.bf16.mxu0 %v3633_v22 }
  0x2f   :  { %2999 = vmatprep.subr.bf16.mxu1 %v3547_v7  ;;  %2695 = vmatprep.mubr.msk.f32.mxu1 %vm3549_vm0, %v3548_v8 }
  0x31   :  { %2979 = vmatpush1.bf16.msra.mxu0 %v3659_v31 }
  0x32   :  { %3001 = vmatpush3.bf16.msra.mxu1 %v3677_v37  ;;  %2981 = vmatprep.subr.bf16.mxu0 %v3665_v33 }
  0x33   :  { %3002 = vmatprep.subr.bf16.mxu1 %v3547_v7 }
  0x35   :  { %2983 = vmatpush1.bf16.msra.mxu0 %v3690_v41 }
  0x36   :  { %3004 = vmatpush3.bf16.msra.mxu1 %v3705_v46  ;;  %2985 = vmatprep.subr.bf16.mxu0 %v3693_v42 }
  0x37   :  { %3005 = vmatprep.subr.bf16.mxu1 %v3547_v7 }
  0x39   :  { %2987 = vmatpush1.bf16.msra.mxu0 %v3718_v50 }
  0x3a   :  { %3007 = vmatpush3.bf16.msra.mxu1 %v3733_v55  ;;  %2989 = vmatprep.subr.bf16.mxu0 %v3721_v51 }
  0x3b   :  { %3008 = vmatprep.subr.bf16.mxu1 %v3547_v7 }
  0x3d   :  { %2991 = vmatpush1.bf16.msra.mxu0 %v3746_v59 }
  0x3e   :  { %3010 = vmatpush3.bf16.msra.mxu1 %v3758_v63  ;;  %2993 = vmatprep.subr.bf16.mxu0 %v3749_v60 }
  0x3f   :  { %3011 = vmatprep.subr.bf16.mxu1 %v3547_v7 }
  0x41   :  { %2995 = vmatpush1.bf16.msra.mxu0 %v3768_v2 }
  0x42   :  { %3013 = vmatpush3.bf16.msra.mxu1 %v3772_v4  ;;  %3021 = vmatprep.subr.bf16.mxu0 %v3578_v3 }
  0x43   :  { %3014 = vmatprep.subr.bf16.mxu1 %v3547_v7 }
  0x46   :  { %3016 = vmatpush3.bf16.msra.mxu1 %v3785_v12 }
  0x47   :  { %3017 = vmatprep.subr.bf16.mxu1 %v3547_v7 }
  0x4a   :  { %3019 = vmatpush3.bf16.msra.mxu1 %v3799_v17 }
  0x4b   :  { %3052 = vmatprep.subr.bf16.mxu1 %v3547_v7 }
  0xf7   :  { %v135_v26 = vpop.f32.mrb[0].mxu0 }
  0xf8   :  { %v217_v27 = vrot.slane %v135_v26, %v3838_v25  ;;  %v137_v28 = vpop.f32.mrb[1].mxu0 }
  0xf9   :  { %v262_v47 = vrot.slane %v137_v28, %v3838_v25 }
  0xfa   :  { %v218_v32 = vcombine.high %v217_v27, %v217_v27  ;;  %v225_v34 = vrot.slane %v217_v27, %v3838_v25 }
  0xfb   :  { %v263_v52 = vcombine.high %v262_v47, %v262_v47  ;;  %v270_v57 = vrot.slane %v262_v47, %v3838_v25 }
  0xfc   :  { %v232_v36 = vrot.slane %v218_v32, %v3838_v25  ;;  %v235_v38 = vadd.f32 %v225_v34, %v66_v30 }
  0xfd   :  { %v277_v62 = vrot.slane %v263_v52, %v3838_v25  ;;  %v280_v0 = vadd.f32 %v270_v57, %v251_v56 }
  0xfe   :  { %v236_v39 = vadd.f32 %v2444_v35, %v232_v36  ;;  %v2445_v40 = vmul.f32 -1.442695, %v235_v38 }
  0xff   :  { %v281_v5 = vadd.f32 %v277_v62, %v252_v61  ;;  %v2447_v13 = vmul.f32 -1.442695, %v280_v0 }
 0x100   :  { %3363 = vpow2.f32 %v2445_v40  ;;  %v2446_v43 = vmul.f32 -1.442695, %v236_v39  ;;  %v206_v44 = vpop.f32.mrb[0].mxu1 }
 0x101   :  { %v2662_v45 = vpop.f32.mrb[1].mxu1  ;;  %v301_v58 = vrot.slane %v206_v44, %v3838_v25  ;;  %v2448_v20 = vmul.f32 -1.442695, %v281_v5 }
 0x102   :  { %3365 = vpow2.f32 %v2446_v43 }
 0x103   :  { %v302_v1 = vcombine.high %v301_v58, %v301_v58  ;;  %v309_v6 = vrot.slane %v301_v58, %v3838_v25 }
 0x105   :  { %v316_v14 = vrot.slane %v302_v1, %v3838_v25 }
 0x10a   :  { %v3364_v48 = vpop.eup %3363 }
 0x10b   :  { %v243_v49 = vadd.f32 1.0, %v3364_v48 }
 0x10c   :  { %v3366_v53 = vpop.eup %3365 }
 0x10d   :  { %v244_v54 = vadd.f32 1.0, %v3366_v53  ;;  %3367 = vrcp.f32 %v243_v49 }
 0x10f   :  { %3369 = vrcp.f32 %v244_v54 }
 0x110   :  { %3371 = vpow2.f32 %v2447_v13 }
 0x111   :  { %3373 = vpow2.f32 %v2448_v20 }
 0x117   :  { %v3368_v19 = vpop.eup %3367 }
 0x118   :  { %v319_v23 = vmul.f32 %v3368_v19, %v309_v6 }
 0x119   :  { %v3370_v26 = vpop.eup %3369 }
 0x11a   :  { %v320_v27 = vmul.f32 %v3370_v26, %v316_v14  ;;  %v325_v28 = vadd.f32 %v321_v18, %v319_v23  ;;  %v3372_v34 = vpop.eup %3371  ;;  %v2449_v18 = vld [vmem:[%s4271_s0 + $0x1] ss:$8 sm:$0x7] }
 0x11b   :  { %v3374_v36 = vpop.eup %3373  ;;  %v288_v38 = vadd.f32 1.0, %v3372_v34 }
 0x11c   :  { %v326_v32 = vadd.f32 %v322_v24, %v320_v27  ;;  %3375 = vtanh.f32 %v325_v28  ;;  %v289_v43 = vadd.f32 1.0, %v3374_v36  ;;  %v2450_v24 = vld [vmem:[%s4271_s0 + $0x19] ss:$8 sm:$0x7] }
 0x11e   :  { %3377 = vtanh.f32 %v326_v32 }
 0x11f   :  { %3379 = vrcp.f32 %v288_v38  ;;  %v583_v38 = vrot.slane %v2449_v18, 1 }
 0x120   :  { %3381 = vrcp.f32 %v289_v43 }
 0x126   :  { %v3376_v39 = vpop.eup %3375 }
 0x128   :  { %v3378_v40 = vpop.eup %3377 }
 0x129   :  { %v331_v44 = vcombine.low %v3376_v39, %v3378_v40  ;;  %v3380_v52 = vpop.eup %3379 }
 0x12a   :  { %v3382_v56 = vpop.eup %3381 }
 0x12b   :  { %v338_v30 = vrot.slane %v331_v44, %v3838_v25 }
 0x12d   :  { %v345_v35 = vrot.slane %v338_v30, %v3838_v25 }
 0x12f   :  { %v347_v45 = vsub.f32 %v3782_v11, %v345_v35 }
 0x131   :  { %v355_v47 = vrot.slane %v347_v45, %v3838_v25 }
 0x133   :  { %v356_v48 = vcombine.high %v355_v47, %v355_v47  ;;  %v363_v49 = vrot.slane %v355_v47, %v3838_v25 }
 0x135   :  { %v370_v53 = vrot.slane %v356_v48, %v3838_v25  ;;  %v373_v54 = vmul.f32 %v3380_v52, %v363_v49 }
 0x137   :  { %v374_v57 = vmul.f32 %v3382_v56, %v370_v53  ;;  %v3861_v58 = vadd.f32 %v3376_v39, %v373_v54 }
 0x139   :  { %v3863_v61 = vadd.f32 %v3378_v40, %v374_v57  ;;  %377 = vst [vmem:[#allocation3] sm:$0x1] %v3861_v58  ;;  %v584_v40 = vrot.slane %v2450_v24, 1 }
 0x13b   :  { %378 = vst [vmem:[#allocation3 + $0x8] sm:$0x1] %v3863_v61  ;;  %v385_v11 = vcombine.low %v3861_v58, %v3863_v61 }
 0x13d   :  { %v392_v62 = vrot.slane %v385_v11, %v3838_v25  ;;  %v653_v11 = vrot.slane %v2449_v18, 2 }
 0x13f   :  { %v399_v0 = vrot.slane %v392_v62, %v3838_v25 }
 0x141   :  { %466 = vmatmul.mubr.f32.vlgmr.msra.gmra.mrb[2].mxu0 %v399_v0  ;;  %2696 = vmatmul.mubr.f32.vlgmr.msra.gmra.mrb[2].mxu1 %v399_v0 }
 0x142   :  { %3023 = vmatpush1.bf16.msra.mxu0 %v3592_v9  ;;  %3054 = vmatpush3.bf16.msra.mxu1 %v3653_v29 }
 0x143   :  { %3025 = vmatprep.subr.bf16.mxu0 %v3594_v10  ;;  %3055 = vmatprep.subr.bf16.mxu1 %v3547_v7 }
 0x144   :  { %755 = vmatprep.mubr.f32.mxu0 %v3548_v8  ;;  %2730 = vmatprep.mubr.msk.f32.mxu1 %vm3549_vm0, %v3548_v8 }
 0x146   :  { %3027 = vmatpush1.bf16.msra.mxu0 %v3612_v15  ;;  %3057 = vmatpush3.bf16.msra.mxu1 %v3677_v37 }
 0x147   :  { %3029 = vmatprep.subr.bf16.mxu0 %v3615_v16  ;;  %3058 = vmatprep.subr.bf16.mxu1 %v3547_v7 }
 0x14a   :  { %3031 = vmatpush1.bf16.msra.mxu0 %v3630_v21  ;;  %3060 = vmatpush3.bf16.msra.mxu1 %v3705_v46 }
 0x14b   :  { %3033 = vmatprep.subr.bf16.mxu0 %v3633_v22  ;;  %3061 = vmatprep.subr.bf16.mxu1 %v3547_v7 }
 0x14e   :  { %3035 = vmatpush1.bf16.msra.mxu0 %v3659_v31  ;;  %3063 = vmatpush3.bf16.msra.mxu1 %v3733_v55 }
 0x14f   :  { %3037 = vmatprep.subr.bf16.mxu0 %v3665_v33  ;;  %3064 = vmatprep.subr.bf16.mxu1 %v3547_v7 }
 0x152   :  { %3039 = vmatpush1.bf16.msra.mxu0 %v3690_v41  ;;  %3066 = vmatpush3.bf16.msra.mxu1 %v3758_v63 }
 0x153   :  { %3041 = vmatprep.subr.bf16.mxu0 %v3693_v42  ;;  %3067 = vmatprep.subr.bf16.mxu1 %v3547_v7 }
 0x156   :  { %3043 = vmatpush1.bf16.msra.mxu0 %v3718_v50  ;;  %3069 = vmatpush3.bf16.msra.mxu1 %v3772_v4 }
 0x157   :  { %3045 = vmatprep.subr.bf16.mxu0 %v3721_v51  ;;  %3070 = vmatprep.subr.bf16.mxu1 %v3547_v7 }
 0x15a   :  { %3047 = vmatpush1.bf16.msra.mxu0 %v3746_v59  ;;  %3072 = vmatpush3.bf16.msra.mxu1 %v3785_v12 }
 0x15b   :  { %3049 = vmatprep.subr.bf16.mxu0 %v3749_v60  ;;  %3073 = vmatprep.subr.bf16.mxu1 %v3547_v7 }
 0x15e   :  { %3051 = vmatpush1.bf16.msra.mxu0 %v3768_v2  ;;  %3075 = vmatpush3.bf16.msra.mxu1 %v3799_v17 }
 0x15f   :  { %3077 = vmatprep.subr.bf16.mxu0 %v3578_v3  ;;  %3108 = vmatprep.subr.bf16.mxu1 %v3547_v7 }
 0x214   :  { %v467_v1 = vpop.f32.mrb[2].mxu0  ;;  %v538_v5 = vpop.f32.mrb[2].mxu1 }
 0x215   :  { %v549_v6 = vrot.slane %v467_v1, %v3838_v25  ;;  %v469_v13 = vpop.f32.mrb[3].mxu0  ;;  %v2697_v14 = vpop.f32.mrb[3].mxu1  ;;  %v633_v53 = vrot.slane %v538_v5, %v3838_v25 }
 0x216   :  { %v594_v23 = vrot.slane %v469_v13, %v3838_v25  ;;  %v654_v13 = vrot.slane %v2450_v24, 2 }
 0x217   :  { %v550_v19 = vcombine.high %v549_v6, %v549_v6  ;;  %v557_v20 = vrot.slane %v549_v6, %v3838_v25  ;;  %v634_v54 = vcombine.high %v633_v53, %v633_v53  ;;  %v641_v57 = vrot.slane %v633_v53, %v3838_v25 }
 0x218   :  { %v595_v34 = vcombine.high %v594_v23, %v594_v23  ;;  %v602_v39 = vrot.slane %v594_v23, %v3838_v25 }
 0x219   :  { %v564_v26 = vrot.slane %v550_v19, %v3838_v25  ;;  %v567_v27 = vadd.f32 %v2449_v18, %v557_v20  ;;  %v648_v1 = vrot.slane %v634_v54, %v3838_v25  ;;  %v2456_v54 = vld [vmem:[%s4271_s0 + $0x1a] ss:$8 sm:$0x7] }
 0x21a   :  { %v609_v43 = vrot.slane %v595_v34, %v3838_v25  ;;  %v612_v44 = vadd.f32 %v602_v39, %v583_v38 }
 0x21b   :  { %v568_v28 = vadd.f32 %v2450_v24, %v564_v26  ;;  %v2451_v32 = vmul.f32 -1.442695, %v567_v27 }
 0x21c   :  { %v613_v30 = vadd.f32 %v609_v43, %v584_v40  ;;  %v2453_v35 = vmul.f32 -1.442695, %v612_v44 }
 0x21d   :  { %3383 = vpow2.f32 %v2451_v32  ;;  %v2452_v36 = vmul.f32 -1.442695, %v568_v28 }
 0x21e   :  { %v2454_v47 = vmul.f32 -1.442695, %v613_v30 }
 0x21f   :  { %3385 = vpow2.f32 %v2452_v36 }
 0x220   :  { %3387 = vpow2.f32 %v2453_v35 }
 0x227   :  { %v3384_v45 = vpop.eup %3383 }
 0x228   :  { %v575_v48 = vadd.f32 1.0, %v3384_v45 }
 0x229   :  { %v3386_v49 = vpop.eup %3385 }
 0x22a   :  { %v576_v52 = vadd.f32 1.0, %v3386_v49  ;;  %3389 = vrcp.f32 %v575_v48  ;;  %v3388_v56 = vpop.eup %3387  ;;  %v2455_v48 = vld [vmem:[%s4271_s0 + $0x2] ss:$8 sm:$0x7] }
 0x22b   :  { %3391 = vpow2.f32 %v2454_v47  ;;  %v620_v19 = vadd.f32 1.0, %v3388_v56 }
 0x22c   :  { %3393 = vrcp.f32 %v576_v52 }
 0x234   :  { %v3390_v62 = vpop.eup %3389 }
 0x235   :  { %v3392_v0 = vpop.eup %3391  ;;  %v651_v6 = vmul.f32 %v3390_v62, %v641_v57 }
 0x236   :  { %v3394_v14 = vpop.eup %3393  ;;  %v621_v27 = vadd.f32 1.0, %v3392_v0 }
 0x237   :  { %v652_v20 = vmul.f32 %v3394_v14, %v648_v1  ;;  %v657_v23 = vadd.f32 %v653_v11, %v651_v6  ;;  %v873_v6 = vrot.slane %v2455_v48, 1  ;;  %v874_v14 = vrot.slane %v2456_v54, 1 }
 0x239   :  { %v658_v26 = vadd.f32 %v654_v13, %v652_v20  ;;  %3395 = vtanh.f32 %v657_v23 }
 0x23a   :  { %3397 = vrcp.f32 %v620_v19 }
 0x23b   :  { %3399 = vtanh.f32 %v658_v26 }
 0x23c   :  { %3401 = vrcp.f32 %v621_v27 }
 0x243   :  { %v3396_v5 = vpop.eup %3395 }
 0x244   :  { %v3398_v28 = vpop.eup %3397  ;;  %v661_v18 = vsub.f32 %v3861_v58, %v3396_v5 }
 0x245   :  { %v3400_v32 = vpop.eup %3399 }
 0x246   :  { %v662_v34 = vsub.f32 %v3863_v61, %v3400_v32  ;;  %v663_v36 = vmul.f32 %v3398_v28, %v661_v18  ;;  %v3402_v38 = vpop.eup %3401 }
 0x248   :  { %v664_v24 = vmul.f32 %v3402_v38, %v662_v34  ;;  %v3923_v39 = vadd.f32 %v3396_v5, %v663_v36 }
 0x24a   :  { %v3925_v40 = vadd.f32 %v3400_v32, %v664_v24  ;;  %667 = vst [vmem:[#allocation3 + $0x1] sm:$0x1] %v3923_v39 }
 0x24c   :  { %668 = vst [vmem:[#allocation3 + $0x9] sm:$0x1] %v3925_v40  ;;  %v675_v43 = vcombine.low %v3923_v39, %v3925_v40 }
 0x24e   :  { %v682_v44 = vrot.slane %v675_v43, %v3838_v25  ;;  %v943_v43 = vrot.slane %v2455_v48, 2 }
 0x250   :  { %v689_v58 = vrot.slane %v682_v44, %v3838_v25 }
 0x252   :  { %756 = vmatmul.mubr.f32.vlgmr.msra.gmra.mrb[4].mxu0 %v689_v58  ;;  %2731 = vmatmul.mubr.f32.vlgmr.msra.gmra.mrb[4].mxu1 %v689_v58 }
 0x253   :  { %3079 = vmatpush1.bf16.msra.mxu0 %v3592_v9  ;;  %3110 = vmatpush3.bf16.msra.mxu1 %v3653_v29 }
 0x254   :  { %3081 = vmatprep.subr.bf16.mxu0 %v3594_v10  ;;  %3111 = vmatprep.subr.bf16.mxu1 %v3547_v7 }
 0x255   :  { %1045 = vmatprep.mubr.f32.mxu0 %v3548_v8  ;;  %2765 = vmatprep.mubr.msk.f32.mxu1 %vm3549_vm0, %v3548_v8 }
 0x257   :  { %3083 = vmatpush1.bf16.msra.mxu0 %v3612_v15  ;;  %3113 = vmatpush3.bf16.msra.mxu1 %v3677_v37 }
 0x258   :  { %3085 = vmatprep.subr.bf16.mxu0 %v3615_v16  ;;  %3114 = vmatprep.subr.bf16.mxu1 %v3547_v7 }
 0x25b   :  { %3087 = vmatpush1.bf16.msra.mxu0 %v3630_v21  ;;  %3116 = vmatpush3.bf16.msra.mxu1 %v3705_v46 }
 0x25c   :  { %3089 = vmatprep.subr.bf16.mxu0 %v3633_v22  ;;  %3117 = vmatprep.subr.bf16.mxu1 %v3547_v7 }
 0x25f   :  { %3091 = vmatpush1.bf16.msra.mxu0 %v3659_v31  ;;  %3119 = vmatpush3.bf16.msra.mxu1 %v3733_v55 }
 0x260   :  { %3093 = vmatprep.subr.bf16.mxu0 %v3665_v33  ;;  %3120 = vmatprep.subr.bf16.mxu1 %v3547_v7 }
 0x263   :  { %3095 = vmatpush1.bf16.msra.mxu0 %v3690_v41  ;;  %3122 = vmatpush3.bf16.msra.mxu1 %v3758_v63 }
 0x264   :  { %3097 = vmatprep.subr.bf16.mxu0 %v3693_v42  ;;  %3123 = vmatprep.subr.bf16.mxu1 %v3547_v7 }
 0x267   :  { %3099 = vmatpush1.bf16.msra.mxu0 %v3718_v50  ;;  %3125 = vmatpush3.bf16.msra.mxu1 %v3772_v4 }
 0x268   :  { %3101 = vmatprep.subr.bf16.mxu0 %v3721_v51  ;;  %3126 = vmatprep.subr.bf16.mxu1 %v3547_v7 }
 0x26b   :  { %3103 = vmatpush1.bf16.msra.mxu0 %v3746_v59  ;;  %3128 = vmatpush3.bf16.msra.mxu1 %v3785_v12 }
 0x26c   :  { %3105 = vmatprep.subr.bf16.mxu0 %v3749_v60  ;;  %3129 = vmatprep.subr.bf16.mxu1 %v3547_v7 }
 0x26f   :  { %3107 = vmatpush1.bf16.msra.mxu0 %v3768_v2  ;;  %3131 = vmatpush3.bf16.msra.mxu1 %v3799_v17 }
 0x270   :  { %3133 = vmatprep.subr.bf16.mxu0 %v3578_v3  ;;  %3164 = vmatprep.subr.bf16.mxu1 %v3547_v7 }
 0x325   :  { %v757_v61 = vpop.f32.mrb[4].mxu0  ;;  %v828_v30 = vpop.f32.mrb[4].mxu1 }
 0x326   :  { %v839_v35 = vrot.slane %v757_v61, %v3838_v25  ;;  %v759_v45 = vpop.f32.mrb[5].mxu0  ;;  %v2732_v47 = vpop.f32.mrb[5].mxu1  ;;  %v923_v34 = vrot.slane %v828_v30, %v3838_v25 }
 0x327   :  { %v884_v53 = vrot.slane %v759_v45, %v3838_v25  ;;  %v944_v45 = vrot.slane %v2456_v54, 2 }
 0x328   :  { %v840_v49 = vcombine.high %v839_v35, %v839_v35  ;;  %v847_v52 = vrot.slane %v839_v35, %v3838_v25  ;;  %v924_v36 = vcombine.high %v923_v34, %v923_v34  ;;  %v931_v24 = vrot.slane %v923_v34, %v3838_v25 }
 0x329   :  { %v885_v0 = vcombine.high %v884_v53, %v884_v53  ;;  %v892_v13 = vrot.slane %v884_v53, %v3838_v25 }
 0x32a   :  { %v854_v56 = vrot.slane %v840_v49, %v3838_v25  ;;  %v857_v57 = vadd.f32 %v2455_v48, %v847_v52  ;;  %v938_v61 = vrot.slane %v924_v36, %v3838_v25  ;;  %v2462_v36 = vld [vmem:[%s4271_s0 + $0x1b] ss:$8 sm:$0x7] }
 0x32b   :  { %v899_v19 = vrot.slane %v885_v0, %v3838_v25  ;;  %v902_v20 = vadd.f32 %v892_v13, %v873_v6 }
 0x32c   :  { %v858_v11 = vadd.f32 %v2456_v54, %v854_v56  ;;  %v2457_v62 = vmul.f32 -1.442695, %v857_v57 }
 0x32d   :  { %v903_v23 = vadd.f32 %v899_v19, %v874_v14  ;;  %v2459_v26 = vmul.f32 -1.442695, %v902_v20 }
 0x32e   :  { %3403 = vpow2.f32 %v2457_v62  ;;  %v2458_v1 = vmul.f32 -1.442695, %v858_v11 }
 0x32f   :  { %v2460_v5 = vmul.f32 -1.442695, %v903_v23 }
 0x330   :  { %3405 = vpow2.f32 %v2458_v1 }
 0x331   :  { %3407 = vpow2.f32 %v2459_v26 }
 0x338   :  { %v3404_v27 = vpop.eup %3403 }
 0x339   :  { %v865_v28 = vadd.f32 1.0, %v3404_v27 }
 0x33a   :  { %v3406_v18 = vpop.eup %3405 }
 0x33b   :  { %v866_v32 = vadd.f32 1.0, %v3406_v18  ;;  %3409 = vrcp.f32 %v865_v28  ;;  %v3408_v38 = vpop.eup %3407  ;;  %v2461_v28 = vld [vmem:[%s4271_s0 + $0x3] ss:$8 sm:$0x7] }
 0x33c   :  { %3411 = vpow2.f32 %v2460_v5  ;;  %v910_v49 = vadd.f32 1.0, %v3408_v38 }
 0x33d   :  { %3413 = vrcp.f32 %v866_v32 }
 0x345   :  { %v3410_v44 = vpop.eup %3409 }
 0x346   :  { %v3412_v58 = vpop.eup %3411  ;;  %v941_v35 = vmul.f32 %v3410_v44, %v931_v24 }
 0x347   :  { %v3414_v47 = vpop.eup %3413  ;;  %v911_v57 = vadd.f32 1.0, %v3412_v58 }
 0x348   :  { %v942_v52 = vmul.f32 %v3414_v47, %v938_v61  ;;  %v947_v53 = vadd.f32 %v943_v43, %v941_v35  ;;  %v1163_v35 = vrot.slane %v2461_v28, 1  ;;  %v1164_v47 = vrot.slane %v2462_v36, 1 }
 0x34a   :  { %v948_v56 = vadd.f32 %v944_v45, %v942_v52  ;;  %3415 = vtanh.f32 %v947_v53 }
 0x34b   :  { %3417 = vrcp.f32 %v910_v49 }
 0x34c   :  { %3419 = vtanh.f32 %v948_v56 }
 0x34d   :  { %3421 = vrcp.f32 %v911_v57 }
 0x354   :  { %v3416_v30 = vpop.eup %3415 }
 0x355   :  { %v3418_v11 = vpop.eup %3417  ;;  %v951_v48 = vsub.f32 %v3923_v39, %v3416_v30 }
 0x356   :  { %v3420_v62 = vpop.eup %3419 }
 0x357   :  { %v952_v0 = vsub.f32 %v3925_v40, %v3420_v62  ;;  %v953_v1 = vmul.f32 %v3418_v11, %v951_v48  ;;  %v3422_v6 = vpop.eup %3421 }
 0x359   :  { %v954_v54 = vmul.f32 %v3422_v6, %v952_v0  ;;  %v3985_v13 = vadd.f32 %v3416_v30, %v953_v1 }
 0x35b   :  { %v3987_v14 = vadd.f32 %v3420_v62, %v954_v54  ;;  %957 = vst [vmem:[#allocation3 + $0x2] sm:$0x1] %v3985_v13 }
 0x35d   :  { %958 = vst [vmem:[#allocation3 + $0xa] sm:$0x1] %v3987_v14  ;;  %v965_v19 = vcombine.low %v3985_v13, %v3987_v14 }
 0x35f   :  { %v972_v20 = vrot.slane %v965_v19, %v3838_v25  ;;  %v1233_v19 = vrot.slane %v2461_v28, 2 }
 0x361   :  { %v979_v39 = vrot.slane %v972_v20, %v3838_v25 }
 0x363   :  { %1046 = vmatmul.mubr.f32.vlgmr.msra.gmra.mrb[6].mxu0 %v979_v39  ;;  %2766 = vmatmul.mubr.f32.vlgmr.msra.gmra.mrb[6].mxu1 %v979_v39 }
 0x364   :  { %3135 = vmatpush1.bf16.msra.mxu0 %v3592_v9  ;;  %3166 = vmatpush3.bf16.msra.mxu1 %v3653_v29 }
 0x365   :  { %3137 = vmatprep.subr.bf16.mxu0 %v3594_v10  ;;  %3167 = vmatprep.subr.bf16.mxu1 %v3547_v7 }
 0x366   :  { %1335 = vmatprep.mubr.f32.mxu0 %v3548_v8  ;;  %2800 = vmatprep.mubr.msk.f32.mxu1 %vm3549_vm0, %v3548_v8 }
 0x368   :  { %3139 = vmatpush1.bf16.msra.mxu0 %v3612_v15  ;;  %3169 = vmatpush3.bf16.msra.mxu1 %v3677_v37 }
 0x369   :  { %3141 = vmatprep.subr.bf16.mxu0 %v3615_v16  ;;  %3170 = vmatprep.subr.bf16.mxu1 %v3547_v7 }
 0x36c   :  { %3143 = vmatpush1.bf16.msra.mxu0 %v3630_v21  ;;  %3172 = vmatpush3.bf16.msra.mxu1 %v3705_v46 }
 0x36d   :  { %3145 = vmatprep.subr.bf16.mxu0 %v3633_v22  ;;  %3173 = vmatprep.subr.bf16.mxu1 %v3547_v7 }
 0x370   :  { %3147 = vmatpush1.bf16.msra.mxu0 %v3659_v31  ;;  %3175 = vmatpush3.bf16.msra.mxu1 %v3733_v55 }
 0x371   :  { %3149 = vmatprep.subr.bf16.mxu0 %v3665_v33  ;;  %3176 = vmatprep.subr.bf16.mxu1 %v3547_v7 }
 0x374   :  { %3151 = vmatpush1.bf16.msra.mxu0 %v3690_v41  ;;  %3178 = vmatpush3.bf16.msra.mxu1 %v3758_v63 }
 0x375   :  { %3153 = vmatprep.subr.bf16.mxu0 %v3693_v42  ;;  %3179 = vmatprep.subr.bf16.mxu1 %v3547_v7 }
 0x378   :  { %3155 = vmatpush1.bf16.msra.mxu0 %v3718_v50  ;;  %3181 = vmatpush3.bf16.msra.mxu1 %v3772_v4 }
 0x379   :  { %3157 = vmatprep.subr.bf16.mxu0 %v3721_v51  ;;  %3182 = vmatprep.subr.bf16.mxu1 %v3547_v7 }
 0x37c   :  { %3159 = vmatpush1.bf16.msra.mxu0 %v3746_v59  ;;  %3184 = vmatpush3.bf16.msra.mxu1 %v3785_v12 }
 0x37d   :  { %3161 = vmatprep.subr.bf16.mxu0 %v3749_v60  ;;  %3185 = vmatprep.subr.bf16.mxu1 %v3547_v7 }
 0x380   :  { %3163 = vmatpush1.bf16.msra.mxu0 %v3768_v2  ;;  %3187 = vmatpush3.bf16.msra.mxu1 %v3799_v17 }
 0x381   :  { %3189 = vmatprep.subr.bf16.mxu0 %v3578_v3  ;;  %3220 = vmatprep.subr.bf16.mxu1 %v3547_v7 }
 0x436   :  { %v1047_v40 = vpop.f32.mrb[6].mxu0  ;;  %v1118_v23 = vpop.f32.mrb[6].mxu1 }
 0x437   :  { %v1129_v26 = vrot.slane %v1047_v40, %v3838_v25  ;;  %v1049_v27 = vpop.f32.mrb[7].mxu0  ;;  %v2767_v5 = vpop.f32.mrb[7].mxu1  ;;  %v1213_v0 = vrot.slane %v1118_v23, %v3838_v25 }
 0x438   :  { %v1174_v34 = vrot.slane %v1049_v27, %v3838_v25  ;;  %v1234_v27 = vrot.slane %v2462_v36, 2 }
 0x439   :  { %v1130_v18 = vcombine.high %v1129_v26, %v1129_v26  ;;  %v1137_v32 = vrot.slane %v1129_v26, %v3838_v25  ;;  %v1214_v1 = vcombine.high %v1213_v0, %v1213_v0  ;;  %v1221_v54 = vrot.slane %v1213_v0, %v3838_v25 }
 0x43a   :  { %v1175_v58 = vcombine.high %v1174_v34, %v1174_v34  ;;  %v1182_v45 = vrot.slane %v1174_v34, %v3838_v25 }
 0x43b   :  { %v1144_v38 = vrot.slane %v1130_v18, %v3838_v25  ;;  %v1147_v24 = vadd.f32 %v2461_v28, %v1137_v32  ;;  %v1228_v40 = vrot.slane %v1214_v1, %v3838_v25  ;;  %v2468_v1 = vld [vmem:[%s4271_s0 + $0x1c] ss:$8 sm:$0x7] }
 0x43c   :  { %v1189_v49 = vrot.slane %v1175_v58, %v3838_v25  ;;  %v1192_v52 = vadd.f32 %v1182_v45, %v1163_v35 }
 0x43d   :  { %v1148_v43 = vadd.f32 %v2462_v36, %v1144_v38  ;;  %v2463_v44 = vmul.f32 -1.442695, %v1147_v24 }
 0x43e   :  { %v1193_v53 = vadd.f32 %v1189_v49, %v1164_v47  ;;  %v2465_v56 = vmul.f32 -1.442695, %v1192_v52 }
 0x43f   :  { %3423 = vpow2.f32 %v2463_v44  ;;  %v2464_v61 = vmul.f32 -1.442695, %v1148_v43 }
 0x440   :  { %v2466_v30 = vmul.f32 -1.442695, %v1193_v53 }
 0x441   :  { %3425 = vpow2.f32 %v2464_v61 }
 0x442   :  { %3427 = vpow2.f32 %v2465_v56 }
 0x449   :  { %v3424_v57 = vpop.eup %3423 }
 0x44a   :  { %v1155_v11 = vadd.f32 1.0, %v3424_v57 }
 0x44b   :  { %v3426_v48 = vpop.eup %3425 }
 0x44c   :  { %v1156_v62 = vadd.f32 1.0, %v3426_v48  ;;  %3429 = vrcp.f32 %v1155_v11  ;;  %v3428_v6 = vpop.eup %3427  ;;  %v2467_v11 = vld [vmem:[%s4271_s0 + $0x4] ss:$8 sm:$0x7] }
 0x44d   :  { %3431 = vpow2.f32 %v2466_v30  ;;  %v1200_v18 = vadd.f32 1.0, %v3428_v6 }
 0x44e   :  { %3433 = vrcp.f32 %v1156_v62 }
 0x456   :  { %v3430_v20 = vpop.eup %3429 }
 0x457   :  { %v3432_v39 = vpop.eup %3431  ;;  %v1231_v26 = vmul.f32 %v3430_v20, %v1221_v54 }
 0x458   :  { %v3434_v5 = vpop.eup %3433  ;;  %v1201_v24 = vadd.f32 1.0, %v3432_v39 }
 0x459   :  { %v1232_v32 = vmul.f32 %v3434_v5, %v1228_v40  ;;  %v1237_v34 = vadd.f32 %v1233_v19, %v1231_v26  ;;  %v1453_v26 = vrot.slane %v2467_v11, 1  ;;  %v1454_v5 = vrot.slane %v2468_v1, 1 }
 0x45b   :  { %v1238_v38 = vadd.f32 %v1234_v27, %v1232_v32  ;;  %3435 = vtanh.f32 %v1237_v34 }
 0x45c   :  { %3437 = vrcp.f32 %v1200_v18 }
 0x45d   :  { %3439 = vtanh.f32 %v1238_v38 }
 0x45e   :  { %3441 = vrcp.f32 %v1201_v24 }
 0x465   :  { %v3436_v23 = vpop.eup %3435 }
 0x466   :  { %v3438_v43 = vpop.eup %3437  ;;  %v1241_v28 = vsub.f32 %v3985_v13, %v3436_v23 }
 0x467   :  { %v3440_v44 = vpop.eup %3439 }
 0x468   :  { %v1242_v58 = vsub.f32 %v3987_v14, %v3440_v44  ;;  %v1243_v61 = vmul.f32 %v3438_v43, %v1241_v28  ;;  %v3442_v35 = vpop.eup %3441 }
 0x46a   :  { %v1244_v36 = vmul.f32 %v3442_v35, %v1242_v58  ;;  %v4047_v45 = vadd.f32 %v3436_v23, %v1243_v61 }
 0x46c   :  { %v4049_v47 = vadd.f32 %v3440_v44, %v1244_v36  ;;  %1247 = vst [vmem:[#allocation3 + $0x3] sm:$0x1] %v4047_v45 }
 0x46e   :  { %1248 = vst [vmem:[#allocation3 + $0xb] sm:$0x1] %v4049_v47  ;;  %v1255_v49 = vcombine.low %v4047_v45, %v4049_v47 }
 0x470   :  { %v1262_v52 = vrot.slane %v1255_v49, %v3838_v25  ;;  %v1523_v49 = vrot.slane %v2467_v11, 2 }
 0x472   :  { %v1269_v13 = vrot.slane %v1262_v52, %v3838_v25 }
 0x474   :  { %1336 = vmatmul.mubr.f32.vlgmr.msra.gmra.mrb[8].mxu0 %v1269_v13  ;;  %2801 = vmatmul.mubr.f32.vlgmr.msra.gmra.mrb[8].mxu1 %v1269_v13 }
 0x475   :  { %3191 = vmatpush1.bf16.msra.mxu0 %v3592_v9  ;;  %3222 = vmatpush3.bf16.msra.mxu1 %v3653_v29 }
 0x476   :  { %3193 = vmatprep.subr.bf16.mxu0 %v3594_v10  ;;  %3223 = vmatprep.subr.bf16.mxu1 %v3547_v7 }
 0x477   :  { %1625 = vmatprep.mubr.f32.mxu0 %v3548_v8  ;;  %2835 = vmatprep.mubr.msk.f32.mxu1 %vm3549_vm0, %v3548_v8 }
 0x479   :  { %3195 = vmatpush1.bf16.msra.mxu0 %v3612_v15  ;;  %3225 = vmatpush3.bf16.msra.mxu1 %v3677_v37 }
 0x47a   :  { %3197 = vmatprep.subr.bf16.mxu0 %v3615_v16  ;;  %3226 = vmatprep.subr.bf16.mxu1 %v3547_v7 }
 0x47d   :  { %3199 = vmatpush1.bf16.msra.mxu0 %v3630_v21  ;;  %3228 = vmatpush3.bf16.msra.mxu1 %v3705_v46 }
 0x47e   :  { %3201 = vmatprep.subr.bf16.mxu0 %v3633_v22  ;;  %3229 = vmatprep.subr.bf16.mxu1 %v3547_v7 }
 0x481   :  { %3203 = vmatpush1.bf16.msra.mxu0 %v3659_v31  ;;  %3231 = vmatpush3.bf16.msra.mxu1 %v3733_v55 }
 0x482   :  { %3205 = vmatprep.subr.bf16.mxu0 %v3665_v33  ;;  %3232 = vmatprep.subr.bf16.mxu1 %v3547_v7 }
 0x485   :  { %3207 = vmatpush1.bf16.msra.mxu0 %v3690_v41  ;;  %3234 = vmatpush3.bf16.msra.mxu1 %v3758_v63 }
 0x486   :  { %3209 = vmatprep.subr.bf16.mxu0 %v3693_v42  ;;  %3235 = vmatprep.subr.bf16.mxu1 %v3547_v7 }
 0x489   :  { %3211 = vmatpush1.bf16.msra.mxu0 %v3718_v50  ;;  %3237 = vmatpush3.bf16.msra.mxu1 %v3772_v4 }
 0x48a   :  { %3213 = vmatprep.subr.bf16.mxu0 %v3721_v51  ;;  %3238 = vmatprep.subr.bf16.mxu1 %v3547_v7 }
 0x48d   :  { %3215 = vmatpush1.bf16.msra.mxu0 %v3746_v59  ;;  %3240 = vmatpush3.bf16.msra.mxu1 %v3785_v12 }
 0x48e   :  { %3217 = vmatprep.subr.bf16.mxu0 %v3749_v60  ;;  %3241 = vmatprep.subr.bf16.mxu1 %v3547_v7 }
 0x491   :  { %3219 = vmatpush1.bf16.msra.mxu0 %v3768_v2  ;;  %3243 = vmatpush3.bf16.msra.mxu1 %v3799_v17 }
 0x492   :  { %3245 = vmatprep.subr.bf16.mxu0 %v3578_v3  ;;  %3276 = vmatprep.subr.bf16.mxu1 %v3547_v7 }
 0x547   :  { %v1337_v14 = vpop.f32.mrb[8].mxu0  ;;  %v1408_v53 = vpop.f32.mrb[8].mxu1 }
 0x548   :  { %v1419_v56 = vrot.slane %v1337_v14, %v3838_v25  ;;  %v1339_v57 = vpop.f32.mrb[9].mxu0  ;;  %v2802_v30 = vpop.f32.mrb[9].mxu1  ;;  %v1503_v58 = vrot.slane %v1408_v53, %v3838_v25 }
 0x549   :  { %v1464_v0 = vrot.slane %v1339_v57, %v3838_v25  ;;  %v1524_v57 = vrot.slane %v2468_v1, 2 }
 0x54a   :  { %v1420_v48 = vcombine.high %v1419_v56, %v1419_v56  ;;  %v1427_v62 = vrot.slane %v1419_v56, %v3838_v25  ;;  %v1504_v61 = vcombine.high %v1503_v58, %v1503_v58  ;;  %v1511_v36 = vrot.slane %v1503_v58, %v3838_v25 }
 0x54b   :  { %v1465_v39 = vcombine.high %v1464_v0, %v1464_v0  ;;  %v1472_v27 = vrot.slane %v1464_v0, %v3838_v25 }
 0x54c   :  { %v1434_v6 = vrot.slane %v1420_v48, %v3838_v25  ;;  %v1437_v54 = vadd.f32 %v2467_v11, %v1427_v62  ;;  %v1518_v14 = vrot.slane %v1504_v61, %v3838_v25 }
 0x54d   :  { %v1479_v18 = vrot.slane %v1465_v39, %v3838_v25  ;;  %v1482_v32 = vadd.f32 %v1472_v27, %v1453_v26 }
 0x54e   :  { %v1438_v19 = vadd.f32 %v2468_v1, %v1434_v6  ;;  %v2469_v20 = vmul.f32 -1.442695, %v1437_v54 }
 0x54f   :  { %v1483_v34 = vadd.f32 %v1479_v18, %v1454_v5  ;;  %v2471_v38 = vmul.f32 -1.442695, %v1482_v32 }
 0x550   :  { %3443 = vpow2.f32 %v2469_v20  ;;  %v2470_v40 = vmul.f32 -1.442695, %v1438_v19 }
 0x551   :  { %v2472_v23 = vmul.f32 -1.442695, %v1483_v34 }
 0x552   :  { %3445 = vpow2.f32 %v2470_v40 }
 0x553   :  { %3447 = vpow2.f32 %v2471_v38 }
 0x55a   :  { %v3444_v24 = vpop.eup %3443 }
 0x55b   :  { %v1445_v43 = vadd.f32 1.0, %v3444_v24 }
 0x55c   :  { %v3446_v28 = vpop.eup %3445 }
 0x55d   :  { %v1446_v44 = vadd.f32 1.0, %v3446_v28  ;;  %3449 = vrcp.f32 %v1445_v43  ;;  %v3448_v35 = vpop.eup %3447  ;;  %v2473_v43 = vld [vmem:[%s4271_s0 + $0x5] ss:$8 sm:$0x7] }
 0x55e   :  { %3451 = vpow2.f32 %v2472_v23  ;;  %v1490_v48 = vadd.f32 1.0, %v3448_v35 }
 0x55f   :  { %3453 = vrcp.f32 %v1446_v44 }
 0x567   :  { %v3450_v52 = vpop.eup %3449 }
 0x568   :  { %v3452_v13 = vpop.eup %3451  ;;  %v1521_v56 = vmul.f32 %v3450_v52, %v1511_v36 }
 0x569   :  { %v3454_v30 = vpop.eup %3453  ;;  %v1491_v54 = vadd.f32 1.0, %v3452_v13 }
 0x56a   :  { %v1522_v62 = vmul.f32 %v3454_v30, %v1518_v14  ;;  %v1527_v0 = vadd.f32 %v1523_v49, %v1521_v56  ;;  %v1743_v14 = vrot.slane %v2473_v43, 1 }
 0x56c   :  { %v1528_v6 = vadd.f32 %v1524_v57, %v1522_v62  ;;  %3455 = vtanh.f32 %v1527_v0 }
 0x56d   :  { %3457 = vrcp.f32 %v1490_v48 }
 0x56e   :  { %3459 = vtanh.f32 %v1528_v6 }
 0x56f   :  { %3461 = vrcp.f32 %v1491_v54 }
 0x576   :  { %v3456_v53 = vpop.eup %3455 }
 0x577   :  { %v3458_v19 = vpop.eup %3457  ;;  %v1531_v11 = vsub.f32 %v4047_v45, %v3456_v53 }
 0x578   :  { %v3460_v20 = vpop.eup %3459 }
 0x579   :  { %v1532_v39 = vsub.f32 %v4049_v47, %v3460_v20  ;;  %v1533_v40 = vmul.f32 %v3458_v19, %v1531_v11  ;;  %v3462_v26 = vpop.eup %3461 }
 0x57b   :  { %v1534_v1 = vmul.f32 %v3462_v26, %v1532_v39  ;;  %v4109_v27 = vadd.f32 %v3456_v53, %v1533_v40 }
 0x57d   :  { %v4111_v5 = vadd.f32 %v3460_v20, %v1534_v1  ;;  %1537 = vst [vmem:[#allocation3 + $0x4] sm:$0x1] %v4109_v27  ;;  %v1813_v1 = vrot.slane %v2473_v43, 2 }
 0x57f   :  { %1538 = vst [vmem:[#allocation3 + $0xc] sm:$0x1] %v4111_v5  ;;  %v1545_v18 = vcombine.low %v4109_v27, %v4111_v5 }
 0x581   :  { %v1552_v32 = vrot.slane %v1545_v18, %v3838_v25 }
 0x583   :  { %v1559_v45 = vrot.slane %v1552_v32, %v3838_v25 }
 0x585   :  { %1626 = vmatmul.mubr.f32.vlgmr.msra.gmra.mrb[10].mxu0 %v1559_v45  ;;  %2836 = vmatmul.mubr.f32.vlgmr.msra.gmra.mrb[10].mxu1 %v1559_v45 }
 0x586   :  { %3247 = vmatpush1.bf16.msra.mxu0 %v3592_v9  ;;  %3278 = vmatpush3.bf16.msra.mxu1 %v3653_v29 }
 0x587   :  { %3249 = vmatprep.subr.bf16.mxu0 %v3594_v10  ;;  %3279 = vmatprep.subr.bf16.mxu1 %v3547_v7 }
 0x588   :  { %1915 = vmatprep.mubr.f32.mxu0 %v3548_v8  ;;  %2870 = vmatprep.mubr.msk.f32.mxu1 %vm3549_vm0, %v3548_v8 }
 0x58a   :  { %3251 = vmatpush1.bf16.msra.mxu0 %v3612_v15  ;;  %3281 = vmatpush3.bf16.msra.mxu1 %v3677_v37 }
 0x58b   :  { %3253 = vmatprep.subr.bf16.mxu0 %v3615_v16  ;;  %3282 = vmatprep.subr.bf16.mxu1 %v3547_v7 }
 0x58e   :  { %3255 = vmatpush1.bf16.msra.mxu0 %v3630_v21  ;;  %3284 = vmatpush3.bf16.msra.mxu1 %v3705_v46 }
 0x58f   :  { %3257 = vmatprep.subr.bf16.mxu0 %v3633_v22  ;;  %3285 = vmatprep.subr.bf16.mxu1 %v3547_v7 }
 0x592   :  { %3259 = vmatpush1.bf16.msra.mxu0 %v3659_v31  ;;  %3287 = vmatpush3.bf16.msra.mxu1 %v3733_v55 }
 0x593   :  { %3261 = vmatprep.subr.bf16.mxu0 %v3665_v33  ;;  %3288 = vmatprep.subr.bf16.mxu1 %v3547_v7 }
 0x596   :  { %3263 = vmatpush1.bf16.msra.mxu0 %v3690_v41  ;;  %3290 = vmatpush3.bf16.msra.mxu1 %v3758_v63 }
 0x597   :  { %3265 = vmatprep.subr.bf16.mxu0 %v3693_v42  ;;  %3291 = vmatprep.subr.bf16.mxu1 %v3547_v7 }
 0x59a   :  { %3267 = vmatpush1.bf16.msra.mxu0 %v3718_v50  ;;  %3293 = vmatpush3.bf16.msra.mxu1 %v3772_v4 }
 0x59b   :  { %3269 = vmatprep.subr.bf16.mxu0 %v3721_v51  ;;  %3294 = vmatprep.subr.bf16.mxu1 %v3547_v7 }
 0x59e   :  { %3271 = vmatpush1.bf16.msra.mxu0 %v3746_v59  ;;  %3296 = vmatpush3.bf16.msra.mxu1 %v3785_v12 }
 0x59f   :  { %3273 = vmatprep.subr.bf16.mxu0 %v3749_v60  ;;  %3297 = vmatprep.subr.bf16.mxu1 %v3547_v7 }
 0x5a2   :  { %3275 = vmatpush1.bf16.msra.mxu0 %v3768_v2  ;;  %3299 = vmatpush3.bf16.msra.mxu1 %v3799_v17 }
 0x5a3   :  { %3301 = vmatprep.subr.bf16.mxu0 %v3578_v3  ;;  %3332 = vmatprep.subr.bf16.mxu1 %v3547_v7  ;;  %v2474_v3 = vld [vmem:[%s4271_s0 + $0x1d] ss:$8 sm:$0x7] }
 0x5a4   :  { %v1744_v57 = vrot.slane %v2474_v3, 1 }
 0x658   :  { %v1627_v47 = vpop.f32.mrb[10].mxu0  ;;  %v1698_v34 = vpop.f32.mrb[10].mxu1 }
 0x659   :  { %v1709_v38 = vrot.slane %v1627_v47, %v3838_v25  ;;  %v1629_v24 = vpop.f32.mrb[11].mxu0  ;;  %v2837_v23 = vpop.f32.mrb[11].mxu1  ;;  %v1793_v20 = vrot.slane %v1698_v34, %v3838_v25 }
 0x65a   :  { %v1754_v58 = vrot.slane %v1629_v24, %v3838_v25 }
 0x65b   :  { %v1710_v28 = vcombine.high %v1709_v38, %v1709_v38  ;;  %v1717_v44 = vrot.slane %v1709_v38, %v3838_v25  ;;  %v1794_v39 = vcombine.high %v1793_v20, %v1793_v20  ;;  %v1801_v26 = vrot.slane %v1793_v20, %v3838_v25 }
 0x65c   :  { %v1755_v52 = vcombine.high %v1754_v58, %v1754_v58  ;;  %v1762_v56 = vrot.slane %v1754_v58, %v3838_v25  ;;  %v1814_v38 = vrot.slane %v2474_v3, 2 }
 0x65d   :  { %v1724_v61 = vrot.slane %v1710_v28, %v3838_v25  ;;  %v1727_v35 = vadd.f32 %v2473_v43, %v1717_v44  ;;  %v1808_v45 = vrot.slane %v1794_v39, %v3838_v25 }
 0x65e   :  { %v1769_v30 = vrot.slane %v1755_v52, %v3838_v25  ;;  %v1772_v48 = vadd.f32 %v1762_v56, %v1743_v14 }
 0x65f   :  { %v1728_v36 = vadd.f32 %v2474_v3, %v1724_v61  ;;  %v2475_v49 = vmul.f32 -1.442695, %v1727_v35 }
 0x660   :  { %v1773_v62 = vadd.f32 %v1769_v30, %v1744_v57  ;;  %v2477_v0 = vmul.f32 -1.442695, %v1772_v48 }
 0x661   :  { %3463 = vpow2.f32 %v2475_v49  ;;  %v2476_v13 = vmul.f32 -1.442695, %v1728_v36 }
 0x662   :  { %v2478_v54 = vmul.f32 -1.442695, %v1773_v62 }
 0x663   :  { %3465 = vpow2.f32 %v2476_v13 }
 0x664   :  { %3467 = vpow2.f32 %v2477_v0 }
 0x66b   :  { %v3464_v6 = vpop.eup %3463 }
 0x66c   :  { %v1735_v53 = vadd.f32 1.0, %v3464_v6 }
 0x66d   :  { %v3466_v19 = vpop.eup %3465 }
 0x66e   :  { %v1736_v11 = vadd.f32 1.0, %v3466_v19  ;;  %3469 = vrcp.f32 %v1735_v53  ;;  %v3468_v40 = vpop.eup %3467 }
 0x66f   :  { %3471 = vpow2.f32 %v2478_v54  ;;  %v1780_v23 = vadd.f32 1.0, %v3468_v40 }
 0x670   :  { %3473 = vrcp.f32 %v1736_v11 }
 0x678   :  { %v3470_v18 = vpop.eup %3469 }
 0x679   :  { %v3472_v32 = vpop.eup %3471  ;;  %v1811_v47 = vmul.f32 %v3470_v18, %v1801_v26 }
 0x67a   :  { %v3474_v24 = vpop.eup %3473  ;;  %v1781_v61 = vadd.f32 1.0, %v3472_v32 }
 0x67b   :  { %v1812_v28 = vmul.f32 %v3474_v24, %v1808_v45  ;;  %v1817_v44 = vadd.f32 %v1813_v1, %v1811_v47 }
 0x67d   :  { %v1818_v58 = vadd.f32 %v1814_v38, %v1812_v28  ;;  %3475 = vtanh.f32 %v1817_v44 }
 0x67e   :  { %3477 = vrcp.f32 %v1780_v23 }
 0x67f   :  { %3479 = vtanh.f32 %v1818_v58 }
 0x680   :  { %3481 = vrcp.f32 %v1781_v61 }
 0x687   :  { %v3476_v34 = vpop.eup %3475 }
 0x688   :  { %v3478_v35 = vpop.eup %3477  ;;  %v1821_v43 = vsub.f32 %v4109_v27, %v3476_v34 }
 0x689   :  { %v3480_v36 = vpop.eup %3479 }
 0x68a   :  { %v1822_v49 = vsub.f32 %v4111_v5, %v3480_v36  ;;  %v1823_v52 = vmul.f32 %v3478_v35, %v1821_v43  ;;  %v3482_v13 = vpop.eup %3481 }
 0x68c   :  { %v1824_v3 = vmul.f32 %v3482_v13, %v1822_v49  ;;  %v4171_v14 = vadd.f32 %v3476_v34, %v1823_v52 }
 0x68e   :  { %v4173_v56 = vadd.f32 %v3480_v36, %v1824_v3  ;;  %1827 = vst [vmem:[#allocation3 + $0x5] sm:$0x1] %v4171_v14 }
 0x690   :  { %1828 = vst [vmem:[#allocation3 + $0xd] sm:$0x1] %v4173_v56  ;;  %v1835_v57 = vcombine.low %v4171_v14, %v4173_v56 }
 0x692   :  { %v1842_v30 = vrot.slane %v1835_v57, %v3838_v25 }
 0x694   :  { %v1849_v27 = vrot.slane %v1842_v30, %v3838_v25 }
 0x696   :  { %1916 = vmatmul.mubr.f32.vlgmr.msra.gmra.mrb[12].mxu0 %v1849_v27  ;;  %2871 = vmatmul.mubr.f32.vlgmr.msra.gmra.mrb[12].mxu1 %v1849_v27  ;;  %v2485_v27 = vld [vmem:[%s4271_s0 + $0x7] ss:$8 sm:$0x7] }
 0x697   :  { %3303 = vmatpush1.bf16.msra.mxu0 %v3592_v9  ;;  %3334 = vmatpush3.bf16.msra.mxu1 %v3653_v29 }
 0x698   :  { %3305 = vmatprep.subr.bf16.mxu0 %v3594_v10  ;;  %3335 = vmatprep.subr.bf16.mxu1 %v3547_v7 }
 0x699   :  { %2205 = vmatprep.mubr.f32.mxu0 %v3548_v8  ;;  %2905 = vmatprep.mubr.msk.f32.mxu1 %vm3549_vm0, %v3548_v8 }
 0x69b   :  { %3307 = vmatpush1.bf16.msra.mxu0 %v3612_v15  ;;  %3337 = vmatpush3.bf16.msra.mxu1 %v3677_v37 }
 0x69c   :  { %3309 = vmatprep.subr.bf16.mxu0 %v3615_v16  ;;  %3338 = vmatprep.subr.bf16.mxu1 %v3547_v7 }
 0x69f   :  { %3311 = vmatpush1.bf16.msra.mxu0 %v3630_v21  ;;  %3340 = vmatpush3.bf16.msra.mxu1 %v3705_v46  ;;  %v2479_v21 = vld [vmem:[%s4271_s0 + $0x6] ss:$8 sm:$0x7] }
 0x6a0   :  { %3313 = vmatprep.subr.bf16.mxu0 %v3633_v22  ;;  %3341 = vmatprep.subr.bf16.mxu1 %v3547_v7  ;;  %v2103_v19 = vrot.slane %v2479_v21, 2 }
 0x6a3   :  { %3315 = vmatpush1.bf16.msra.mxu0 %v3659_v31  ;;  %3343 = vmatpush3.bf16.msra.mxu1 %v3733_v55 }
 0x6a4   :  { %3317 = vmatprep.subr.bf16.mxu0 %v3665_v33  ;;  %3344 = vmatprep.subr.bf16.mxu1 %v3547_v7 }
 0x6a7   :  { %3319 = vmatpush1.bf16.msra.mxu0 %v3690_v41  ;;  %3346 = vmatpush3.bf16.msra.mxu1 %v3758_v63 }
 0x6a8   :  { %3321 = vmatprep.subr.bf16.mxu0 %v3693_v42  ;;  %3347 = vmatprep.subr.bf16.mxu1 %v3547_v7 }
 0x6ab   :  { %3323 = vmatpush1.bf16.msra.mxu0 %v3718_v50  ;;  %3349 = vmatpush3.bf16.msra.mxu1 %v3772_v4 }
 0x6ac   :  { %3325 = vmatprep.subr.bf16.mxu0 %v3721_v51  ;;  %3350 = vmatprep.subr.bf16.mxu1 %v3547_v7  ;;  %v2033_v51 = vrot.slane %v2479_v21, 1 }
 0x6af   :  { %3327 = vmatpush1.bf16.msra.mxu0 %v3746_v59  ;;  %3352 = vmatpush3.bf16.msra.mxu1 %v3785_v12 }
 0x6b0   :  { %3329 = vmatprep.subr.bf16.mxu0 %v3749_v60  ;;  %3353 = vmatprep.subr.bf16.mxu1 %v3547_v7  ;;  %v2480_v7 = vld [vmem:[%s4271_s0 + $0x1e] ss:$8 sm:$0x7] }
 0x6b1   :  { %v2034_v59 = vrot.slane %v2480_v7, 1  ;;  %v2104_v26 = vrot.slane %v2480_v7, 2 }
 0x6b3   :  { %3331 = vmatpush1.bf16.msra.mxu0 %v3768_v2  ;;  %3355 = vmatpush3.bf16.msra.mxu1 %v3799_v17 }
 0x769   :  { %v1917_v8 = vpop.f32.mrb[12].mxu0  ;;  %v1988_v9 = vpop.f32.mrb[12].mxu1 }
 0x76a   :  { %v1999_v10 = vrot.slane %v1917_v8, %v3838_v25  ;;  %v1919_v15 = vpop.f32.mrb[13].mxu0  ;;  %v2872_v16 = vpop.f32.mrb[13].mxu1  ;;  %v2083_v0 = vrot.slane %v1988_v9, %v3838_v25 }
 0x76b   :  { %v2044_v31 = vrot.slane %v1919_v15, %v3838_v25  ;;  %v2486_v15 = vld [vmem:[%s4271_s0 + $0x1f] ss:$8 sm:$0x7]  ;;  %s3551_s0 = smov [#allocation3]  }
 0x76c   :  { %v2000_v22 = vcombine.high %v1999_v10, %v1999_v10  ;;  %v2007_v29 = vrot.slane %v1999_v10, %v3838_v25  ;;  %v2084_v6 = vcombine.high %v2083_v0, %v2083_v0  ;;  %v2091_v53 = vrot.slane %v2083_v0, %v3838_v25  ;;  %s2433_s23 = sshll.u32 %s3551_s0, 4  ;;  %s2434_s23 = int_to_ptr.vmem [resolvable:$true] %s2433_s23 }
 0x76d   :  { %v2045_v46 = vcombine.high %v2044_v31, %v2044_v31  ;;  %v2052_v55 = vrot.slane %v2044_v31, %v3838_v25  ;;  %s3523_s24 = scalar_lea.vmem %s2434_s23, 256  ;;  %p3528_p1 = scmp.lt.s32.totalorder %s2434_s23, %s2434_s23 }
 0x76e   :  { %v2014_v33 = vrot.slane %v2000_v22, %v3838_v25  ;;  %v2017_v37 = vadd.f32 %v2479_v21, %v2007_v29  ;;  %v2098_v39 = vrot.slane %v2084_v6, %v3838_v25  ;;  %p3524_p0 = scmp.ne.s32.totalorder %s2434_s23, %s3523_s24  ;;  %p3529_p2 = scmp.lt.s32.totalorder %s3523_s24, %s3523_s24 }
 0x76f   :  { %v2059_v60 = vrot.slane %v2045_v46, %v3838_v25  ;;  %v2062_v63 = vadd.f32 %v2052_v55, %v2033_v51 }
 0x770   :  { %v2018_v41 = vadd.f32 %v2480_v7, %v2014_v33  ;;  %v2481_v42 = vmul.f32 -1.442695, %v2017_v37  ;;  %v2323_v33 = vrot.slane %v2485_v27, 1  ;;  %p3530_p3 = por %p3529_p2, %p3528_p1 }
 0x771   :  { %v2063_v2 = vadd.f32 %v2059_v60, %v2034_v59  ;;  %v2483_v4 = vmul.f32 -1.442695, %v2062_v63 }
 0x772   :  { %3483 = vpow2.f32 %v2481_v42  ;;  %v2482_v50 = vmul.f32 -1.442695, %v2018_v41  ;;  %v2324_v41 = vrot.slane %v2486_v15, 1  ;;  %p3531_p4 = pnand %p3530_p3, %p3524_p0 }
 0x773   :  { %v2484_v17 = vmul.f32 -1.442695, %v2063_v2 }
 0x774   :  { %3485 = vpow2.f32 %v2482_v50 }
 0x775   :  { %3487 = vpow2.f32 %v2483_v4 }
 0x77c   :  { %v3484_v12 = vpop.eup %3483 }
 0x77d   :  { %v2025_v5 = vadd.f32 1.0, %v3484_v12 }
 0x77e   :  { %v3486_v48 = vpop.eup %3485 }
 0x77f   :  { %v2026_v62 = vadd.f32 1.0, %v3486_v48  ;;  %3489 = vrcp.f32 %v2025_v5  ;;  %v3488_v54 = vpop.eup %3487  ;;  %v2393_v48 = vrot.slane %v2485_v27, 2 }
 0x780   :  { %3491 = vpow2.f32 %v2484_v17  ;;  %v2070_v18 = vadd.f32 1.0, %v3488_v54 }
 0x781   :  { %3493 = vrcp.f32 %v2026_v62 }
 0x789   :  { %v3490_v11 = vpop.eup %3489 }
 0x78a   :  { %v3492_v20 = vpop.eup %3491  ;;  %v2101_v40 = vmul.f32 %v3490_v11, %v2091_v53  ;;  %v2394_v53 = vrot.slane %v2486_v15, 2 }
 0x78b   :  { %v3494_v1 = vpop.eup %3493  ;;  %v2071_v38 = vadd.f32 1.0, %v3492_v20 }
 0x78c   :  { %v2102_v32 = vmul.f32 %v3494_v1, %v2098_v39  ;;  %v2107_v45 = vadd.f32 %v2103_v19, %v2101_v40 }
 0x78e   :  { %v2108_v47 = vadd.f32 %v2104_v26, %v2102_v32  ;;  %3495 = vtanh.f32 %v2107_v45 }
 0x78f   :  { %3497 = vrcp.f32 %v2070_v18 }
 0x790   :  { %3499 = vtanh.f32 %v2108_v47 }
 0x791   :  { %3501 = vrcp.f32 %v2071_v38 }
 0x798   :  { %v3496_v24 = vpop.eup %3495 }
 0x799   :  { %v3498_v23 = vpop.eup %3497  ;;  %v2111_v28 = vsub.f32 %v4171_v14, %v3496_v24 }
 0x79a   :  { %v3500_v44 = vpop.eup %3499 }
 0x79b   :  { %v2112_v58 = vsub.f32 %v4173_v56, %v3500_v44  ;;  %v2113_v61 = vmul.f32 %v3498_v23, %v2111_v28  ;;  %v3502_v34 = vpop.eup %3501 }
 0x79d   :  { %v2114_v35 = vmul.f32 %v3502_v34, %v2112_v58  ;;  %v4231_v43 = vadd.f32 %v3496_v24, %v2113_v61 }
 0x79f   :  { %v4233_v36 = vadd.f32 %v3500_v44, %v2114_v35  ;;  %2117 = vst [vmem:[#allocation3 + $0x6] sm:$0x1] %v4231_v43 }
 0x7a1   :  { %2118 = vst [vmem:[#allocation3 + $0xe] sm:$0x1] %v4233_v36  ;;  %v2125_v49 = vcombine.low %v4231_v43, %v4233_v36 }
 0x7a3   :  { %v2132_v52 = vrot.slane %v2125_v49, %v3838_v25 }
 0x7a5   :  { %v2139_v13 = vrot.slane %v2132_v52, %v3838_v25 }
 0x7a7   :  { %2206 = vmatmul.mubr.f32.vlgmr.msra.gmra.mrb[14].mxu0 %v2139_v13  ;;  %2906 = vmatmul.mubr.f32.vlgmr.msra.gmra.mrb[14].mxu1 %v2139_v13 }
 0x87a   :  { %v2207_v3 = vpop.f32.mrb[14].mxu0  ;;  %v2278_v14 = vpop.f32.mrb[14].mxu1 }
 0x87b   :  { %v2289_v56 = vrot.slane %v2207_v3, %v3838_v25  ;;  %v2209_v57 = vpop.f32.mrb[15].mxu0  ;;  %v2907_v30 = vpop.f32.mrb[15].mxu1  ;;  %v2373_v4 = vrot.slane %v2278_v14, %v3838_v25 }
 0x87c   :  { %v2334_v10 = vrot.slane %v2209_v57, %v3838_v25 }
 0x87d   :  { %v2290_v8 = vcombine.high %v2289_v56, %v2289_v56  ;;  %v2297_v9 = vrot.slane %v2289_v56, %v3838_v25  ;;  %v2374_v12 = vcombine.high %v2373_v4, %v2373_v4  ;;  %v2381_v5 = vrot.slane %v2373_v4, %v3838_v25 }
 0x87e   :  { %v2335_v31 = vcombine.high %v2334_v10, %v2334_v10  ;;  %v2342_v37 = vrot.slane %v2334_v10, %v3838_v25 }
 0x87f   :  { %v2304_v16 = vrot.slane %v2290_v8, %v3838_v25  ;;  %v2307_v21 = vadd.f32 %v2485_v27, %v2297_v9  ;;  %v2388_v6 = vrot.slane %v2374_v12, %v3838_v25 }
 0x880   :  { %v2349_v42 = vrot.slane %v2335_v31, %v3838_v25  ;;  %v2352_v46 = vadd.f32 %v2342_v37, %v2323_v33 }
 0x881   :  { %v2308_v22 = vadd.f32 %v2486_v15, %v2304_v16  ;;  %v2487_v29 = vmul.f32 -1.442695, %v2307_v21 }
 0x882   :  { %v2353_v50 = vadd.f32 %v2349_v42, %v2324_v41  ;;  %v2489_v51 = vmul.f32 -1.442695, %v2352_v46 }
 0x883   :  { %3503 = vpow2.f32 %v2487_v29  ;;  %v2488_v7 = vmul.f32 -1.442695, %v2308_v22 }
 0x884   :  { %v2490_v59 = vmul.f32 -1.442695, %v2353_v50 }
 0x885   :  { %3505 = vpow2.f32 %v2488_v7 }
 0x886   :  { %3507 = vpow2.f32 %v2489_v51 }
 0x88d   :  { %v3504_v55 = vpop.eup %3503 }
 0x88e   :  { %v2315_v60 = vadd.f32 1.0, %v3504_v55 }
 0x88f   :  { %v3506_v63 = vpop.eup %3505 }
 0x890   :  { %v2316_v2 = vadd.f32 1.0, %v3506_v63  ;;  %3509 = vrcp.f32 %v2315_v60  ;;  %v3508_v17 = vpop.eup %3507 }
 0x891   :  { %3511 = vpow2.f32 %v2490_v59  ;;  %v2360_v11 = vadd.f32 1.0, %v3508_v17 }
 0x892   :  { %3513 = vrcp.f32 %v2316_v2 }
 0x89a   :  { %v3510_v62 = vpop.eup %3509 }
 0x89b   :  { %v3512_v0 = vpop.eup %3511  ;;  %v2391_v54 = vmul.f32 %v3510_v62, %v2381_v5 }
 0x89c   :  { %v3514_v19 = vpop.eup %3513  ;;  %v2361_v26 = vadd.f32 1.0, %v3512_v0 }
 0x89d   :  { %v2392_v20 = vmul.f32 %v3514_v19, %v2388_v6  ;;  %v2397_v39 = vadd.f32 %v2393_v48, %v2391_v54 }
 0x89f   :  { %v2398_v40 = vadd.f32 %v2394_v53, %v2392_v20  ;;  %3515 = vtanh.f32 %v2397_v39 }
 0x8a0   :  { %3517 = vrcp.f32 %v2360_v11 }
 0x8a1   :  { %3519 = vtanh.f32 %v2398_v40 }
 0x8a2   :  { %3521 = vrcp.f32 %v2361_v26 }
 0x8a9   :  { %v3516_v1 = vpop.eup %3515 }
 0x8aa   :  { %v3518_v18 = vpop.eup %3517  ;;  %v2401_v32 = vsub.f32 %v4231_v43, %v3516_v1 }
 0x8ab   :  { %v3520_v45 = vpop.eup %3519 }
 0x8ac   :  { %v2402_v47 = vsub.f32 %v4233_v36, %v3520_v45  ;;  %v2403_v38 = vmul.f32 %v3518_v18, %v2401_v32  ;;  %v3522_v24 = vpop.eup %3521 }
 0x8ae   :  { %v2404_v23 = vmul.f32 %v3522_v24, %v2402_v47  ;;  %v2405_v28 = vadd.f32 %v3516_v1, %v2403_v38 }
 0x8b0   :  { %v2406_v44 = vadd.f32 %v3520_v45, %v2404_v23  ;;  %2407 = vst [vmem:[#allocation3 + $0x7] sm:$0x1] %v2405_v28 }
 0x8b2   :  { %2408 = vst [vmem:[#allocation3 + $0xf] sm:$0x1] %v2406_v44  ;;  %v2411_v58 = vcombine.low %v2405_v28, %v2406_v44 }
 0x8b3   :  { %3534 = shalt.err (!%p3531_p4)
}
 0x8b4   :  { %s3535_s27 = scalar_lea.hbm %s4273_s2, 256 }
 0x8b5   :  { %p3536_p5 = scmp.ne.s32.totalorder %s4273_s2, %s3535_s27  ;;  %p3539_p6 = scmp.lt.u32.totalorder %s3535_s27, %s4273_s2 }
 0x8b7   :  { %p3541_p7 = pnand %p3539_p6, %p3536_p5 }
 0x8b9   :  { %3544 = shalt.err (!%p3541_p7)
}
 0x8ba   :  { %s3552_s4 = smov 128   ;;  %s3553_s5 = smov 8   ;;  %v2418_v61 = vrot.slane %v2411_v58, %v3838_v25 }
 0x8bb   :  { %2439 = dma.vmem_to_hbm [thread:$0]  %s2434_s23, 256, %s4273_s2, [#allocation4], %s3552_s4, %s3552_s4, %s3553_s5  }
 0x8bc   :  { %2491 = vst.sshfl [vmem:[#allocation2] sm:$0x5 pattern:$0x73625140] %v2418_v61 }
 0x8bd   :  { %3545 = dma.done.wait [#allocation4], 256  }
 0x8be   :  { %3546 = vsyncadd [#allocation4], 4294967040 }
 0x8bf   :  { %2443 = vsyncpa [#allocation4], 1 }

</bundles_post_ra>
